<compile_context>
chip_gen: v7x
topology: tpu7x:2x2x1
jax: 0.10.0
libtpu: 0.0.40
codegen_flags: <defaults>
</compile_context>

<pallas_src>
import jax
import jax.numpy as jnp
import numpy as np
from jax.experimental import pallas as pl
from jax.experimental.pallas import tpu as pltpu

IMAGE_SHAPE = (28, 28, 1)
IN_FEATURES = int(np.prod(IMAGE_SHAPE))   # 784
H1, H2 = 512, 256
OUT = 1
OUT_PAD = 128                              # lane-dense padded output width
BN_EPS = 1e-5
NEG_SLOPE = 0.2


def _discriminator_kernel(
    x_ref,                      # (B, 784)  bf16
    w1_ref, g1_ref, be1_ref,    # (784,512) bf16, (1,512) f32, (1,512) f32
    w2_ref, g2_ref, be2_ref,    # (512,256) bf16, (1,256) f32, (1,256) f32
    w3_ref, b3_ref,             # (256,128) bf16 (col 0 real), (1,128) f32
    o_ref,                      # (B, 128)  f32 (col 0 real)
):
    inv_b = 1.0 / x_ref.shape[0]  # static batch size

    # --- Linear(784 -> 512), bf16 MXU, f32 accumulate. Bias dropped: it is
    # exactly cancelled by the BatchNorm mean subtraction below. ---
    h = jnp.dot(x_ref[...], w1_ref[...], preferred_element_type=jnp.float32)

    # --- BatchNorm1d(512): one-pass stats + folded affine (single FMA) ---
    mean = jnp.sum(h, axis=0, keepdims=True) * inv_b
    ex2 = jnp.sum(h * h, axis=0, keepdims=True) * inv_b
    var = jnp.maximum(ex2 - mean * mean, 0.0)      # clamp: cancellation guard
    scale = g1_ref[...] * jax.lax.rsqrt(var + BN_EPS)
    shift = be1_ref[...] - mean * scale
    h = h * scale + shift

    # --- LeakyReLU(0.2) ---
    h = jnp.maximum(h, NEG_SLOPE * h)

    # --- Linear(512 -> 256), bf16 MXU, f32 accumulate (bias cancelled by BN) ---
    h = jnp.dot(h.astype(jnp.bfloat16), w2_ref[...],
                preferred_element_type=jnp.float32)

    # --- BatchNorm1d(256): one-pass stats + folded affine ---
    mean = jnp.sum(h, axis=0, keepdims=True) * inv_b
    ex2 = jnp.sum(h * h, axis=0, keepdims=True) * inv_b
    var = jnp.maximum(ex2 - mean * mean, 0.0)
    scale = g2_ref[...] * jax.lax.rsqrt(var + BN_EPS)
    shift = be2_ref[...] - mean * scale
    h = h * scale + shift

    # --- LeakyReLU(0.2) ---
    h = jnp.maximum(h, NEG_SLOPE * h)

    # --- Linear(256 -> 1) padded to N=128: lane-dense MXU matmul, then an
    # unmasked full-width store. Only column 0 carries the real logit. ---
    logits = jnp.dot(h.astype(jnp.bfloat16), w3_ref[...],
                     preferred_element_type=jnp.float32) + b3_ref[...]
    o_ref[...] = jax.nn.sigmoid(logits)


def discriminator_forward(x, params):
    """x: (B, 784) float32. Returns (B, 1) float32 probabilities."""
    B = x.shape[0]
    x_bf16 = x.astype(jnp.bfloat16)   # halve the dominant input DMA

    args = (
        x_bf16,
        params["w1"], params["g1"], params["be1"],
        params["w2"], params["g2"], params["be2"],
        params["w3p"], params["b3p"],
    )
    vmem = pl.BlockSpec(memory_space=pltpu.MemorySpace.VMEM)

    # Explicit scoped-VMEM limit sized from the footprint; capped at 64 MiB so
    # the same value is legal on v7x (64 MiB physical) and v5e/v6e (128 MiB).
    weight_bytes = (IN_FEATURES * H1 + H1 * H2 + H2 * OUT_PAD) * 2
    per_row_bytes = IN_FEATURES * 2 + (H1 + H2 + OUT_PAD) * 4 * 2  # acts + temps
    vmem_limit = int(2 * weight_bytes + B * per_row_bytes + (8 << 20))
    vmem_limit = max(16 << 20, min(vmem_limit, 64 << 20))

    out = pl.pallas_call(
        _discriminator_kernel,
        out_shape=jax.ShapeDtypeStruct((B, OUT_PAD), jnp.float32),
        in_specs=[vmem] * len(args),
        out_specs=vmem,
        compiler_params=pltpu.CompilerParams(vmem_limit_bytes=vmem_limit),
    )(*args)
    return out[:, :OUT]


def init_params(key):
    """Deterministic init mimicking PyTorch defaults.
    Linear: U(-1/sqrt(fan_in), 1/sqrt(fan_in)) for weight & bias.
    BatchNorm1d: weight=1, bias=0.
    Weights are stored bf16 (~1e-3-level numerical divergence from the f32
    PyTorch reference, acceptable for a GAN discriminator); BN params and
    biases stay f32. b1/b2 are kept only for the plain-JAX reference — the
    kernel never uses them (BN cancels them exactly)."""
    keys = jax.random.split(key, 6)

    def linear(kw, kb, fan_in, fan_out):
        bound = 1.0 / np.sqrt(fan_in)
        w = jax.random.uniform(kw, (fan_in, fan_out), jnp.float32, -bound, bound)
        b = jax.random.uniform(kb, (1, fan_out), jnp.float32, -bound, bound)
        return w, b

    w1, b1 = linear(keys[0], keys[1], IN_FEATURES, H1)
    w2, b2 = linear(keys[2], keys[3], H1, H2)
    w3, b3 = linear(keys[4], keys[5], H2, OUT)

    # Pad the last layer to a lane-dense N=128 (only column 0 nonzero).
    w3p = jnp.pad(w3, ((0, 0), (0, OUT_PAD - OUT))).astype(jnp.bfloat16)
    b3p = jnp.pad(b3, ((0, 0), (0, OUT_PAD - OUT)))

    return {
        "w1": w1.astype(jnp.bfloat16), "b1": b1,
        "g1": jnp.ones((1, H1), jnp.float32), "be1": jnp.zeros((1, H1), jnp.float32),
        "w2": w2.astype(jnp.bfloat16), "b2": b2,
        "g2": jnp.ones((1, H2), jnp.float32), "be2": jnp.zeros((1, H2), jnp.float32),
        "w3p": w3p, "b3": b3, "b3p": b3p,
    }


def _reference_forward(x, p):
    """Plain-JAX reference (mirrors bf16 weight/input casts, but keeps the
    b1/b2 biases and uses the classic two-pass variance / unfolded BN affine
    to validate the kernel's bias-cancelled, one-pass, folded formulation)."""
    h = jnp.dot(x.astype(jnp.bfloat16), p["w1"],
                preferred_element_type=jnp.float32) + p["b1"]
    m = h.mean(0, keepdims=True)
    v = ((h - m) ** 2).mean(0, keepdims=True)
    h = (h - m) / jnp.sqrt(v + BN_EPS) * p["g1"] + p["be1"]
    h = jnp.where(h >= 0, h, NEG_SLOPE * h)

    h = jnp.dot(h.astype(jnp.bfloat16), p["w2"],
                preferred_element_type=jnp.float32) + p["b2"]
    m = h.mean(0, keepdims=True)
    v = ((h - m) ** 2).mean(0, keepdims=True)
    h = (h - m) / jnp.sqrt(v + BN_EPS) * p["g2"] + p["be2"]
    h = jnp.where(h >= 0, h, NEG_SLOPE * h)

    logits = jnp.dot(h.astype(jnp.bfloat16), p["w3p"],
                     preferred_element_type=jnp.float32)[:, :OUT] + p["b3"]
    return jax.nn.sigmoid(logits)


if __name__ == "__main__":
    key = jax.random.PRNGKey(0)
    k_params, k_x = jax.random.split(key)

    params = init_params(k_params)

    # Small batch, multiple of 16 (bf16 sublane packing); BN (train mode)
    # needs B > 1. Inputs shaped like flattened 28x28x1 images.
    B = 16
    x = jax.random.normal(k_x, (B, IN_FEATURES), jnp.float32)

    out = discriminator_forward(x, params)
    out = jax.block_until_ready(out)

    ref = _reference_forward(x, params)
    np.testing.assert_allclose(np.asarray(out), np.asarray(ref), rtol=1e-3, atol=1e-3)

    assert out.shape == (B, OUT)
    print("KERNEL_OK")
</pallas_src>

<mosaic_0001>
module attributes {stable_mosaic.version = 11 : i64} {
  func.func @_discriminator_kernel(%arg0: memref<16x784xbf16, #tpu.memory_space<vmem>>, %arg1: memref<784x512xbf16, #tpu.memory_space<vmem>>, %arg2: memref<1x512xf32, #tpu.memory_space<vmem>>, %arg3: memref<1x512xf32, #tpu.memory_space<vmem>>, %arg4: memref<512x256xbf16, #tpu.memory_space<vmem>>, %arg5: memref<1x256xf32, #tpu.memory_space<vmem>>, %arg6: memref<1x256xf32, #tpu.memory_space<vmem>>, %arg7: memref<256x128xbf16, #tpu.memory_space<vmem>>, %arg8: memref<1x128xf32, #tpu.memory_space<vmem>>, %arg9: memref<16x128xf32, #tpu.memory_space<vmem>>) attributes {dimension_semantics = [], scalar_prefetch = 0 : i64, scratch_operands = 0 : i64, tpu.core_type = #tpu.core_type<tc>} {
    %c0 = arith.constant 0 : index
    %c0_0 = arith.constant 0 : index
    %0 = vector.load %arg0[%c0, %c0_0] : memref<16x784xbf16, #tpu.memory_space<vmem>>, vector<16x784xbf16>
    %c0_1 = arith.constant 0 : index
    %c0_2 = arith.constant 0 : index
    %1 = vector.load %arg1[%c0_1, %c0_2] : memref<784x512xbf16, #tpu.memory_space<vmem>>, vector<784x512xbf16>
    %cst = arith.constant dense<0.000000e+00> : vector<16x512xf32>
    %2 = tpu.matmul %0, %1, %cst {dimension_numbers = #tpu.dot_dimension_numbers<[1], [0], [0], [1], [0, 0, 1, 1], [], []>} : vector<16x784xbf16>, vector<784x512xbf16>, vector<16x512xf32> -> vector<16x512xf32>
    %cst_3 = arith.constant dense<0.000000e+00> : vector<512xf32>
    %3 = vector.multi_reduction <add>, %2, %cst_3 [0] : vector<16x512xf32> to vector<512xf32>
    %4 = vector.shape_cast %3 : vector<512xf32> to vector<1x512xf32>
    %cst_4 = arith.constant 6.250000e-02 : f32
    %5 = vector.broadcast %cst_4 : f32 to vector<1x512xf32>
    %6 = arith.mulf %4, %5 : vector<1x512xf32>
    %7 = arith.mulf %2, %2 : vector<16x512xf32>
    %cst_5 = arith.constant dense<0.000000e+00> : vector<512xf32>
    %8 = vector.multi_reduction <add>, %7, %cst_5 [0] : vector<16x512xf32> to vector<512xf32>
    %9 = vector.shape_cast %8 : vector<512xf32> to vector<1x512xf32>
    %cst_6 = arith.constant 6.250000e-02 : f32
    %10 = vector.broadcast %cst_6 : f32 to vector<1x512xf32>
    %11 = arith.mulf %9, %10 : vector<1x512xf32>
    %12 = arith.mulf %6, %6 : vector<1x512xf32>
    %13 = arith.subf %11, %12 : vector<1x512xf32>
    %cst_7 = arith.constant 0.000000e+00 : f32
    %14 = vector.broadcast %cst_7 : f32 to vector<1x512xf32>
    %15 = arith.maximumf %13, %14 : vector<1x512xf32>
    %c0_8 = arith.constant 0 : index
    %c0_9 = arith.constant 0 : index
    %16 = vector.load %arg2[%c0_8, %c0_9] : memref<1x512xf32, #tpu.memory_space<vmem>>, vector<1x512xf32>
    %cst_10 = arith.constant 9.99999974E-6 : f32
    %17 = vector.broadcast %cst_10 : f32 to vector<1x512xf32>
    %18 = arith.addf %15, %17 : vector<1x512xf32>
    %19 = math.rsqrt %18 : vector<1x512xf32>
    %20 = arith.mulf %16, %19 : vector<1x512xf32>
    %c0_11 = arith.constant 0 : index
    %c0_12 = arith.constant 0 : index
    %21 = vector.load %arg3[%c0_11, %c0_12] : memref<1x512xf32, #tpu.memory_space<vmem>>, vector<1x512xf32>
    %22 = arith.mulf %6, %20 : vector<1x512xf32>
    %23 = arith.subf %21, %22 : vector<1x512xf32>
    %24 = vector.broadcast %20 : vector<1x512xf32> to vector<16x512xf32>
    %25 = arith.mulf %2, %24 : vector<16x512xf32>
    %26 = vector.broadcast %23 : vector<1x512xf32> to vector<16x512xf32>
    %27 = arith.addf %25, %26 : vector<16x512xf32>
    %cst_13 = arith.constant 2.000000e-01 : f32
    %28 = vector.broadcast %cst_13 : f32 to vector<16x512xf32>
    %29 = arith.mulf %28, %27 : vector<16x512xf32>
    %30 = arith.maximumf %27, %29 : vector<16x512xf32>
    %31 = arith.truncf %30 : vector<16x512xf32> to vector<16x512xbf16>
    %c0_14 = arith.constant 0 : index
    %c0_15 = arith.constant 0 : index
    %32 = vector.load %arg4[%c0_14, %c0_15] : memref<512x256xbf16, #tpu.memory_space<vmem>>, vector<512x256xbf16>
    %cst_16 = arith.constant dense<0.000000e+00> : vector<16x256xf32>
    %33 = tpu.matmul %31, %32, %cst_16 {dimension_numbers = #tpu.dot_dimension_numbers<[1], [0], [0], [1], [0, 0, 1, 1], [], []>} : vector<16x512xbf16>, vector<512x256xbf16>, vector<16x256xf32> -> vector<16x256xf32>
    %cst_17 = arith.constant dense<0.000000e+00> : vector<256xf32>
    %34 = vector.multi_reduction <add>, %33, %cst_17 [0] : vector<16x256xf32> to vector<256xf32>
    %35 = vector.shape_cast %34 : vector<256xf32> to vector<1x256xf32>
    %cst_18 = arith.constant 6.250000e-02 : f32
    %36 = vector.broadcast %cst_18 : f32 to vector<1x256xf32>
    %37 = arith.mulf %35, %36 : vector<1x256xf32>
    %38 = arith.mulf %33, %33 : vector<16x256xf32>
    %cst_19 = arith.constant dense<0.000000e+00> : vector<256xf32>
    %39 = vector.multi_reduction <add>, %38, %cst_19 [0] : vector<16x256xf32> to vector<256xf32>
    %40 = vector.shape_cast %39 : vector<256xf32> to vector<1x256xf32>
    %cst_20 = arith.constant 6.250000e-02 : f32
    %41 = vector.broadcast %cst_20 : f32 to vector<1x256xf32>
    %42 = arith.mulf %40, %41 : vector<1x256xf32>
    %43 = arith.mulf %37, %37 : vector<1x256xf32>
    %44 = arith.subf %42, %43 : vector<1x256xf32>
    %cst_21 = arith.constant 0.000000e+00 : f32
    %45 = vector.broadcast %cst_21 : f32 to vector<1x256xf32>
    %46 = arith.maximumf %44, %45 : vector<1x256xf32>
    %c0_22 = arith.constant 0 : index
    %c0_23 = arith.constant 0 : index
    %47 = vector.load %arg5[%c0_22, %c0_23] : memref<1x256xf32, #tpu.memory_space<vmem>>, vector<1x256xf32>
    %cst_24 = arith.constant 9.99999974E-6 : f32
    %48 = vector.broadcast %cst_24 : f32 to vector<1x256xf32>
    %49 = arith.addf %46, %48 : vector<1x256xf32>
    %50 = math.rsqrt %49 : vector<1x256xf32>
    %51 = arith.mulf %47, %50 : vector<1x256xf32>
    %c0_25 = arith.constant 0 : index
    %c0_26 = arith.constant 0 : index
    %52 = vector.load %arg6[%c0_25, %c0_26] : memref<1x256xf32, #tpu.memory_space<vmem>>, vector<1x256xf32>
    %53 = arith.mulf %37, %51 : vector<1x256xf32>
    %54 = arith.subf %52, %53 : vector<1x256xf32>
    %55 = vector.broadcast %51 : vector<1x256xf32> to vector<16x256xf32>
    %56 = arith.mulf %33, %55 : vector<16x256xf32>
    %57 = vector.broadcast %54 : vector<1x256xf32> to vector<16x256xf32>
    %58 = arith.addf %56, %57 : vector<16x256xf32>
    %cst_27 = arith.constant 2.000000e-01 : f32
    %59 = vector.broadcast %cst_27 : f32 to vector<16x256xf32>
    %60 = arith.mulf %59, %58 : vector<16x256xf32>
    %61 = arith.maximumf %58, %60 : vector<16x256xf32>
    %62 = arith.truncf %61 : vector<16x256xf32> to vector<16x256xbf16>
    %c0_28 = arith.constant 0 : index
    %c0_29 = arith.constant 0 : index
    %63 = vector.load %arg7[%c0_28, %c0_29] : memref<256x128xbf16, #tpu.memory_space<vmem>>, vector<256x128xbf16>
    %cst_30 = arith.constant dense<0.000000e+00> : vector<16x128xf32>
    %64 = tpu.matmul %62, %63, %cst_30 {dimension_numbers = #tpu.dot_dimension_numbers<[1], [0], [0], [1], [0, 0, 1, 1], [], []>} : vector<16x256xbf16>, vector<256x128xbf16>, vector<16x128xf32> -> vector<16x128xf32>
    %c0_31 = arith.constant 0 : index
    %c0_32 = arith.constant 0 : index
    %65 = vector.load %arg8[%c0_31, %c0_32] : memref<1x128xf32, #tpu.memory_space<vmem>>, vector<1x128xf32>
    %66 = vector.broadcast %65 : vector<1x128xf32> to vector<16x128xf32>
    %67 = arith.addf %64, %66 : vector<16x128xf32>
    %68 = arith.negf %67 : vector<16x128xf32>
    %69 = math.exp %68 : vector<16x128xf32>
    %cst_33 = arith.constant 1.000000e+00 : f32
    %70 = vector.broadcast %cst_33 : f32 to vector<16x128xf32>
    %71 = arith.addf %70, %69 : vector<16x128xf32>
    %72 = arith.divf %70, %71 : vector<16x128xf32>
    %c0_34 = arith.constant 0 : index
    %c0_35 = arith.constant 0 : index
    %73 = vector.load %arg9[%c0_34, %c0_35] : memref<16x128xf32, #tpu.memory_space<vmem>>, vector<16x128xf32>
    tpu.vector_store %arg9[%c0_34, %c0_35], %72 {strides = array<i32>} : memref<16x128xf32, #tpu.memory_space<vmem>>, vector<16x128xf32>,
    return
  }
}

</mosaic_0001>

<bundles_post_ra>
// kernel: tpu_custom_call.1
= control target key start
LH: loop header
LB: loop body
LE: loop exit
PB: predicated region body
PF: predicated region fallthrough
CT: control target
= control target key end

     0   :  { %14 = vsyncpa [#allocation3], 0  ;;  %s3881_s0 = inlined_call_operand.hbm [shape: bf16[16,784], index: 0, kind: input, shape index: {}]   ;;  %s3882_s1 = inlined_call_operand.hbm [shape: bf16[784,512], index: 1, kind: input, shape index: {}]   ;;  %s3883_s2 = inlined_call_operand.vmem [shape: f32[1,512], index: 2, kind: input, shape index: {}]   ;;  %s3884_s3 = inlined_call_operand.vmem [shape: f32[1,512], index: 3, kind: input, shape index: {}]   ;;  %s3885_s4 = inlined_call_operand.hbm [shape: bf16[512,256], index: 4, kind: input, shape index: {}]   ;;  %s3886_s5 = inlined_call_operand.vmem [shape: f32[1,256], index: 5, kind: input, shape index: {}]   ;;  %s3887_s6 = inlined_call_operand.vmem [shape: f32[1,256], index: 6, kind: input, shape index: {}]   ;;  %s3888_s7 = inlined_call_operand.hbm [shape: bf16[256,128], index: 7, kind: input, shape index: {}]   ;;  %s3889_s8 = inlined_call_operand.vmem [shape: f32[1,128], index: 8, kind: input, shape index: {}]   ;;  %s3890_s9 = inlined_call_operand.hbm [shape: f32[16,128], index: 9, kind: output, shape index: {}]  }
   0x1   :  { %15 = vsyncpa [#allocation6], 0 }
   0x2   :  { %16 = vsyncpa [#allocation9], 0 }
   0x3   :  { %17 = vsyncpa [#allocation4], 0  ;;  %s3606_s30 = smov [#allocation5]   ;;  %s3488_s13 = scalar_lea.hbm %s3882_s1, 25088 }
   0x4   :  { %s35_s10 = sshll.u32 %s3606_s30, 4  ;;  %p3489_p0 = scmp.ne.s32.totalorder %s3882_s1, %s3488_s13  ;;  %s36_s10 = int_to_ptr.vmem [resolvable:$true] %s35_s10 }
   0x5   :  { %p3492_p1 = scmp.lt.u32.totalorder %s3488_s13, %s3882_s1 }
   0x7   :  { %p3494_p2 = pnand %p3492_p1, %p3489_p0 }
   0x9   :  { %3497 = shalt.err (!%p3494_p2)
}
   0xa   :  { %s3498_s18 = scalar_lea.vmem %s36_s10, 25088  ;;  %p3503_p4 = scmp.lt.s32.totalorder %s36_s10, %s36_s10 }
   0xb   :  { %p3499_p3 = scmp.ne.s32.totalorder %s36_s10, %s3498_s18  ;;  %p3504_p5 = scmp.lt.s32.totalorder %s3498_s18, %s3498_s18 }
   0xd   :  { %p3505_p6 = por %p3504_p5, %p3503_p4 }
   0xf   :  { %p3506_p7 = pnand %p3505_p6, %p3499_p3 }
  0x11   :  { %3509 = shalt.err (!%p3506_p7)
}
  0x12   :  { %s3607_s19 = smov 256   ;;  %s3608_s20 = smov 16  }
  0x13   :  { %41 = dma.hbm_to_vmem [thread:$0]  %s3882_s1, 25088, %s36_s10, [#allocation6], %s3607_s19, %s3607_s19, %s3608_s20  }
  0x14   :  { %s3609_s23 = smov [#allocation2]   ;;  %s3510_s27 = scalar_lea.hbm %s3881_s0, 896 }
  0x15   :  { %s23_s24 = sshll.u32 %s3609_s23, 4  ;;  %p3511_p8 = scmp.ne.s32.totalorder %s3881_s0, %s3510_s27  ;;  %s24_s24 = int_to_ptr.vmem [resolvable:$true] %s23_s24 }
  0x16   :  { %p3514_p9 = scmp.lt.u32.totalorder %s3510_s27, %s3881_s0 }
  0x18   :  { %p3516_p10 = pnand %p3514_p9, %p3511_p8 }
  0x1a   :  { %3519 = shalt.err (!%p3516_p10)
}
  0x1b   :  { %s3520_s12 = scalar_lea.vmem %s24_s24, 896  ;;  %p3525_p12 = scmp.lt.s32.totalorder %s24_s24, %s24_s24 }
  0x1c   :  { %p3521_p11 = scmp.ne.s32.totalorder %s24_s24, %s3520_s12  ;;  %p3526_p13 = scmp.lt.s32.totalorder %s3520_s12, %s3520_s12 }
  0x1e   :  { %p3527_p0 = por %p3526_p13, %p3525_p12 }
  0x20   :  { %p3528_p1 = pnand %p3527_p0, %p3521_p11 }
  0x22   :  { %3531 = shalt.err (!%p3528_p1)
}
  0x23   :  { %s3610_s1 = smov 448   ;;  %s3611_s10 = smov 28  }
  0x24   :  { %29 = dma.hbm_to_vmem [thread:$0]  %s3881_s0, 896, %s24_s24, [#allocation3], %s3610_s1, %s3610_s1, %s3611_s10  }
  0x25   :  { %s3612_s15 = smov [#allocation7]   ;;  %s3532_s19 = scalar_lea.hbm %s3885_s4, 8192 }
  0x26   :  { %s51_s16 = sshll.u32 %s3612_s15, 4  ;;  %p3533_p2 = scmp.ne.s32.totalorder %s3885_s4, %s3532_s19  ;;  %s52_s16 = int_to_ptr.vmem [resolvable:$true] %s51_s16 }
  0x27   :  { %p3536_p3 = scmp.lt.u32.totalorder %s3532_s19, %s3885_s4 }
  0x29   :  { %p3538_p4 = pnand %p3536_p3, %p3533_p2 }
  0x2b   :  { %3541 = shalt.err (!%p3538_p4)
}
  0x2c   :  { %s3542_s25 = scalar_lea.vmem %s52_s16, 8192  ;;  %p3547_p6 = scmp.lt.s32.totalorder %s52_s16, %s52_s16 }
  0x2d   :  { %p3543_p5 = scmp.ne.s32.totalorder %s52_s16, %s3542_s25  ;;  %p3548_p7 = scmp.lt.s32.totalorder %s3542_s25, %s3542_s25 }
  0x2f   :  { %p3549_p8 = por %p3548_p7, %p3547_p6 }
  0x31   :  { %p3550_p9 = pnand %p3549_p8, %p3543_p5 }
  0x33   :  { %3553 = shalt.err (!%p3550_p9)
}
  0x34   :  { %s3613_s0 = smov 128   ;;  %s3614_s24 = smov 8  }
  0x35   :  { %57 = dma.hbm_to_vmem [thread:$0]  %s3885_s4, 8192, %s52_s16, [#allocation6], %s3613_s0, %s3613_s0, %s3614_s24  }
  0x36   :  { %s3615_s28 = smov [#allocation8]   ;;  %s3554_s12 = scalar_lea.hbm %s3888_s7, 2048 }
  0x37   :  { %s67_s29 = sshll.u32 %s3615_s28, 4  ;;  %p3555_p10 = scmp.ne.s32.totalorder %s3888_s7, %s3554_s12  ;;  %s68_s29 = int_to_ptr.vmem [resolvable:$true] %s67_s29 }
  0x38   :  { %p3558_p11 = scmp.lt.u32.totalorder %s3554_s12, %s3888_s7 }
  0x3a   :  { %p3560_p12 = pnand %p3558_p11, %p3555_p10 }
  0x3c   :  { %3563 = shalt.err (!%p3560_p12)
}
  0x3d   :  { %s3564_s15 = scalar_lea.vmem %s68_s29, 2048  ;;  %p3569_p0 = scmp.lt.s32.totalorder %s68_s29, %s68_s29 }
  0x3e   :  { %p3565_p13 = scmp.ne.s32.totalorder %s68_s29, %s3564_s15  ;;  %p3570_p1 = scmp.lt.s32.totalorder %s3564_s15, %s3564_s15 }
  0x40   :  { %p3571_p2 = por %p3570_p1, %p3569_p0 }
  0x42   :  { %p3572_p3 = pnand %p3571_p2, %p3565_p13 }
  0x44   :  { %3575 = shalt.err (!%p3572_p3)
}
  0x45   :  { %s3616_s4 = smov 64   ;;  %s3617_s16 = smov 4  }
  0x46   :  { %73 = dma.hbm_to_vmem [thread:$0]  %s3888_s7, 2048, %s68_s29, [#allocation9], %s3616_s4, %s3616_s4, %s3617_s16  }
  0x47   :  { %3598 = dma.done.wait [#allocation3], 896  }
  0x48   :  { %3599 = vsyncadd [#allocation3], 4294966400 }
  0x49   :  { %3600 = dma.done.wait [#allocation6], 33280  }
  0x4a   :  { %3601 = vsyncadd [#allocation6], 4294934016 }
  0x4b   :  { %3602 = dma.done.wait [#allocation9], 2048  }
  0x4c   :  { %3603 = vsyncadd [#allocation9], 4294965248  ;;  %v3052_v0 = vld [vmem:[#allocation5 + $0x4] ss:$16 sps:$4 sm:$0xff]   ;;  %v3056_v2 = vld [vmem:[#allocation5] ss:$16 sps:$4 sm:$0xff]  }
  0x4d   :  { %v3054_v1 = vld [vmem:[#allocation5 + $0x204] ss:$16 sps:$4 sm:$0xff]   ;;  %1312 = vmatprep.subr.bf16.mxu1 %v3052_v0  ;;  %v3057_v3 = vld [vmem:[#allocation5 + $0x200] ss:$16 sps:$4 sm:$0xff]   ;;  %v3150_v49 = vld [vmem:[#allocation2 + $0x4] ss:$28 sps:$4 sm:$0xff]  }
  0x4e   :  { %1355 = vmatprep.subr.bf16.mxu0 %v3054_v1  ;;  %v3058_v4 = vld [vmem:[#allocation5 + $0x24] ss:$16 sps:$4 sm:$0xff]   ;;  %1313 = vmatpush1.bf16.msra.mxu1 %v3056_v2  ;;  %v3062_v6 = vld [vmem:[#allocation5 + $0x20] ss:$16 sps:$4 sm:$0xff]   ;;  %vm1308_vm0 = vcmask 130048   ;;  %s3620_s25 = smov [#allocation10]  }
  0x4f   :  { %1356 = vmatpush1.bf16.msra.mxu0 %v3057_v3  ;;  %v3060_v5 = vld [vmem:[#allocation5 + $0x224] ss:$16 sps:$4 sm:$0xff]   ;;  %1314 = vmatprep.subr.bf16.mxu1 %v3058_v4  ;;  %v3063_v7 = vld [vmem:[#allocation5 + $0x220] ss:$16 sps:$4 sm:$0xff]   ;;  %v3159_v3 = vld [vmem:[#allocation5 + $0xc] ss:$16 sps:$4 sm:$0xff]  }
  0x50   :  { %1357 = vmatprep.subr.bf16.mxu0 %v3060_v5  ;;  %v3064_v8 = vld [vmem:[#allocation5 + $0x44] ss:$16 sps:$4 sm:$0xff]   ;;  %v3068_v10 = vld [vmem:[#allocation5 + $0x40] ss:$16 sps:$4 sm:$0xff]   ;;  %1344 = vmatprep.mubr.bf16.mxu1 %v3150_v49  ;;  %s2685_s26 = sshll.u32 %s3620_s25, 4  ;;  %s2686_s26 = int_to_ptr.vmem [resolvable:$true] %s2685_s26 }
  0x51   :  { %v3066_v9 = vld [vmem:[#allocation5 + $0x244] ss:$16 sps:$4 sm:$0xff]   ;;  %v3069_v11 = vld [vmem:[#allocation5 + $0x240] ss:$16 sps:$4 sm:$0xff]   ;;  %p3581_p5 = scmp.lt.s32.totalorder %s2686_s26, %s2686_s26 }
  0x52   :  { %1315 = vmatpush1.bf16.msra.mxu1 %v3062_v6  ;;  %v3070_v12 = vld [vmem:[#allocation5 + $0x64] ss:$16 sps:$4 sm:$0xff]   ;;  %v3074_v14 = vld [vmem:[#allocation5 + $0x60] ss:$16 sps:$4 sm:$0xff]  }
  0x53   :  { %1358 = vmatpush1.bf16.msra.mxu0 %v3063_v7  ;;  %1316 = vmatprep.subr.bf16.mxu1 %v3064_v8  ;;  %v3072_v13 = vld [vmem:[#allocation5 + $0x264] ss:$16 sps:$4 sm:$0xff]   ;;  %v3075_v15 = vld [vmem:[#allocation5 + $0x260] ss:$16 sps:$4 sm:$0xff]   ;;  %v3157_v7 = vld [vmem:[#allocation5 + $0x8] ss:$16 sps:$4 sm:$0xff]  }
  0x54   :  { %1359 = vmatprep.subr.bf16.mxu0 %v3066_v9  ;;  %v3076_v16 = vld [vmem:[#allocation5 + $0x84] ss:$16 sps:$4 sm:$0xff]   ;;  %v3080_v18 = vld [vmem:[#allocation5 + $0x80] ss:$16 sps:$4 sm:$0xff]   ;;  %v3165_v9 = vld [vmem:[#allocation5 + $0x2c] ss:$16 sps:$4 sm:$0xff]  }
  0x55   :  { %v3078_v17 = vld [vmem:[#allocation5 + $0x284] ss:$16 sps:$4 sm:$0xff]   ;;  %v3081_v19 = vld [vmem:[#allocation5 + $0x280] ss:$16 sps:$4 sm:$0xff]  }
  0x56   :  { %1317 = vmatpush1.bf16.msra.mxu1 %v3068_v10  ;;  %v3082_v20 = vld [vmem:[#allocation5 + $0xa4] ss:$16 sps:$4 sm:$0xff]   ;;  %v3086_v22 = vld [vmem:[#allocation5 + $0xa0] ss:$16 sps:$4 sm:$0xff]  }
  0x57   :  { %1360 = vmatpush1.bf16.msra.mxu0 %v3069_v11  ;;  %1318 = vmatprep.subr.bf16.mxu1 %v3070_v12  ;;  %v3084_v21 = vld [vmem:[#allocation5 + $0x2a4] ss:$16 sps:$4 sm:$0xff]   ;;  %v3087_v23 = vld [vmem:[#allocation5 + $0x2a0] ss:$16 sps:$4 sm:$0xff]   ;;  %v3163_v11 = vld [vmem:[#allocation5 + $0x28] ss:$16 sps:$4 sm:$0xff]  }
  0x58   :  { %1361 = vmatprep.subr.bf16.mxu0 %v3072_v13  ;;  %v3088_v24 = vld [vmem:[#allocation5 + $0xc4] ss:$16 sps:$4 sm:$0xff]   ;;  %v3092_v26 = vld [vmem:[#allocation5 + $0xc0] ss:$16 sps:$4 sm:$0xff]   ;;  %v3171_v13 = vld [vmem:[#allocation5 + $0x4c] ss:$16 sps:$4 sm:$0xff]  }
  0x59   :  { %v3090_v25 = vld [vmem:[#allocation5 + $0x2c4] ss:$16 sps:$4 sm:$0xff]   ;;  %v3093_v27 = vld [vmem:[#allocation5 + $0x2c0] ss:$16 sps:$4 sm:$0xff]  }
  0x5a   :  { %1319 = vmatpush1.bf16.msra.mxu1 %v3074_v14  ;;  %v3094_v28 = vld [vmem:[#allocation5 + $0xe4] ss:$16 sps:$4 sm:$0xff]   ;;  %v3098_v30 = vld [vmem:[#allocation5 + $0xe0] ss:$16 sps:$4 sm:$0xff]  }
  0x5b   :  { %1362 = vmatpush1.bf16.msra.mxu0 %v3075_v15  ;;  %1320 = vmatprep.subr.bf16.mxu1 %v3076_v16  ;;  %v3096_v29 = vld [vmem:[#allocation5 + $0x2e4] ss:$16 sps:$4 sm:$0xff]   ;;  %v3099_v31 = vld [vmem:[#allocation5 + $0x2e0] ss:$16 sps:$4 sm:$0xff]   ;;  %v3169_v15 = vld [vmem:[#allocation5 + $0x48] ss:$16 sps:$4 sm:$0xff]  }
  0x5c   :  { %1363 = vmatprep.subr.bf16.mxu0 %v3078_v17  ;;  %v3100_v32 = vld [vmem:[#allocation5 + $0x104] ss:$16 sps:$4 sm:$0xff]   ;;  %v3104_v34 = vld [vmem:[#allocation5 + $0x100] ss:$16 sps:$4 sm:$0xff]   ;;  %v3177_v17 = vld [vmem:[#allocation5 + $0x6c] ss:$16 sps:$4 sm:$0xff]  }
  0x5d   :  { %v3102_v33 = vld [vmem:[#allocation5 + $0x304] ss:$16 sps:$4 sm:$0xff]   ;;  %v3105_v35 = vld [vmem:[#allocation5 + $0x300] ss:$16 sps:$4 sm:$0xff]  }
  0x5e   :  { %1321 = vmatpush1.bf16.msra.mxu1 %v3080_v18  ;;  %v3106_v36 = vld [vmem:[#allocation5 + $0x124] ss:$16 sps:$4 sm:$0xff]   ;;  %v3110_v38 = vld [vmem:[#allocation5 + $0x120] ss:$16 sps:$4 sm:$0xff]  }
  0x5f   :  { %1364 = vmatpush1.bf16.msra.mxu0 %v3081_v19  ;;  %1322 = vmatprep.subr.bf16.mxu1 %v3082_v20  ;;  %v3108_v37 = vld [vmem:[#allocation5 + $0x324] ss:$16 sps:$4 sm:$0xff]   ;;  %v3111_v39 = vld [vmem:[#allocation5 + $0x320] ss:$16 sps:$4 sm:$0xff]   ;;  %v3175_v19 = vld [vmem:[#allocation5 + $0x68] ss:$16 sps:$4 sm:$0xff]  }
  0x60   :  { %1365 = vmatprep.subr.bf16.mxu0 %v3084_v21  ;;  %v3112_v40 = vld [vmem:[#allocation5 + $0x144] ss:$16 sps:$4 sm:$0xff]   ;;  %v3116_v42 = vld [vmem:[#allocation5 + $0x140] ss:$16 sps:$4 sm:$0xff]   ;;  %v3183_v21 = vld [vmem:[#allocation5 + $0x8c] ss:$16 sps:$4 sm:$0xff]  }
  0x61   :  { %v3114_v41 = vld [vmem:[#allocation5 + $0x344] ss:$16 sps:$4 sm:$0xff]   ;;  %v3117_v43 = vld [vmem:[#allocation5 + $0x340] ss:$16 sps:$4 sm:$0xff]  }
  0x62   :  { %1323 = vmatpush1.bf16.msra.mxu1 %v3086_v22  ;;  %v3118_v44 = vld [vmem:[#allocation5 + $0x164] ss:$16 sps:$4 sm:$0xff]   ;;  %v3122_v46 = vld [vmem:[#allocation5 + $0x160] ss:$16 sps:$4 sm:$0xff]  }
  0x63   :  { %1366 = vmatpush1.bf16.msra.mxu0 %v3087_v23  ;;  %1324 = vmatprep.subr.bf16.mxu1 %v3088_v24  ;;  %v3120_v45 = vld [vmem:[#allocation5 + $0x364] ss:$16 sps:$4 sm:$0xff]   ;;  %v3123_v47 = vld [vmem:[#allocation5 + $0x360] ss:$16 sps:$4 sm:$0xff]   ;;  %v3181_v23 = vld [vmem:[#allocation5 + $0x88] ss:$16 sps:$4 sm:$0xff]  }
  0x64   :  { %1367 = vmatprep.subr.bf16.mxu0 %v3090_v25  ;;  %v3124_v48 = vld [vmem:[#allocation5 + $0x184] ss:$16 sps:$4 sm:$0xff]   ;;  %v3128_v52 = vld [vmem:[#allocation5 + $0x180] ss:$16 sps:$4 sm:$0xff]   ;;  %v3189_v25 = vld [vmem:[#allocation5 + $0xac] ss:$16 sps:$4 sm:$0xff]  }
  0x65   :  { %v3126_v50 = vld [vmem:[#allocation5 + $0x384] ss:$16 sps:$4 sm:$0xff]   ;;  %v3129_v53 = vld [vmem:[#allocation5 + $0x380] ss:$16 sps:$4 sm:$0xff]  }
  0x66   :  { %1325 = vmatpush1.bf16.msra.mxu1 %v3092_v26  ;;  %v3722_v51 = vld [vmem:[#allocation2 + $0xc] ss:$28 sps:$4 sm:$0xff]   ;;  %v3725_v4 = vld [vmem:[#allocation2] ss:$28 sps:$4 sm:$0xff]  }
  0x67   :  { %1368 = vmatpush1.bf16.msra.mxu0 %v3093_v27  ;;  %1326 = vmatprep.subr.bf16.mxu1 %v3094_v28  ;;  %v3130_v54 = vld [vmem:[#allocation5 + $0x1a4] ss:$16 sps:$4 sm:$0xff]   ;;  %v3134_v56 = vld [vmem:[#allocation5 + $0x1a0] ss:$16 sps:$4 sm:$0xff]   ;;  %v3187_v27 = vld [vmem:[#allocation5 + $0xa8] ss:$16 sps:$4 sm:$0xff]  }
  0x68   :  { %1369 = vmatprep.subr.bf16.mxu0 %v3096_v29  ;;  %1387 = vmatprep.mubr.bf16.mxu0 %v3722_v51  ;;  %v3132_v55 = vld [vmem:[#allocation5 + $0x3a4] ss:$16 sps:$4 sm:$0xff]   ;;  %v3135_v57 = vld [vmem:[#allocation5 + $0x3a0] ss:$16 sps:$4 sm:$0xff]   ;;  %v3195_v29 = vld [vmem:[#allocation5 + $0xcc] ss:$16 sps:$4 sm:$0xff]  }
  0x69   :  { %v3136_v58 = vld [vmem:[#allocation5 + $0x1c4] ss:$16 sps:$4 sm:$0xff]   ;;  %v3140_v60 = vld [vmem:[#allocation5 + $0x1c0] ss:$16 sps:$4 sm:$0xff]  }
  0x6a   :  { %1327 = vmatpush1.bf16.msra.mxu1 %v3098_v30  ;;  %v3138_v59 = vld [vmem:[#allocation5 + $0x3c4] ss:$16 sps:$4 sm:$0xff]   ;;  %v3141_v61 = vld [vmem:[#allocation5 + $0x3c0] ss:$16 sps:$4 sm:$0xff]  }
  0x6b   :  { %1370 = vmatpush1.bf16.msra.mxu0 %v3099_v31  ;;  %1328 = vmatprep.subr.bf16.mxu1 %v3100_v32  ;;  %v3142_v62 = vld [vmem:[#allocation5 + $0x1e4] ss:$16 sps:$4 sm:$0xff]   ;;  %v3146_v0 = vld [vmem:[#allocation5 + $0x1e0] ss:$16 sps:$4 sm:$0xff]   ;;  %v3193_v31 = vld [vmem:[#allocation5 + $0xc8] ss:$16 sps:$4 sm:$0xff]  }
  0x6c   :  { %1371 = vmatprep.subr.bf16.mxu0 %v3102_v33  ;;  %v3144_v63 = vld [vmem:[#allocation5 + $0x3e4] ss:$16 sps:$4 sm:$0xff]   ;;  %v3147_v1 = vld [vmem:[#allocation5 + $0x3e0] ss:$16 sps:$4 sm:$0xff]   ;;  %v3201_v33 = vld [vmem:[#allocation5 + $0xec] ss:$16 sps:$4 sm:$0xff]  }
  0x6d   :  { %v3156_v2 = vld [vmem:[#allocation5 + $0x404] ss:$16 sps:$4 sm:$0xff]   ;;  %v3727_v5 = vld [vmem:[#allocation2 + $0x8] ss:$28 sps:$4 sm:$0xff]  }
  0x6e   :  { %1329 = vmatpush1.bf16.msra.mxu1 %v3104_v34  ;;  %v3154_v6 = vld [vmem:[#allocation5 + $0x400] ss:$16 sps:$4 sm:$0xff]   ;;  %v3162_v8 = vld [vmem:[#allocation5 + $0x424] ss:$16 sps:$4 sm:$0xff]   ;;  %v3731_v34 = vld [vmem:[#allocation2 + $0x14] ss:$28 sps:$4 sm:$0xff]  }
  0x6f   :  { %1372 = vmatpush1.bf16.msra.mxu0 %v3105_v35  ;;  %1330 = vmatprep.subr.bf16.mxu1 %v3106_v36  ;;  %v3160_v10 = vld [vmem:[#allocation5 + $0x420] ss:$16 sps:$4 sm:$0xff]   ;;  %v3168_v12 = vld [vmem:[#allocation5 + $0x444] ss:$16 sps:$4 sm:$0xff]   ;;  %v3199_v36 = vld [vmem:[#allocation5 + $0xe8] ss:$16 sps:$4 sm:$0xff]  }
  0x70   :  { %1373 = vmatprep.subr.bf16.mxu0 %v3108_v37  ;;  %v3166_v14 = vld [vmem:[#allocation5 + $0x440] ss:$16 sps:$4 sm:$0xff]   ;;  %v3174_v16 = vld [vmem:[#allocation5 + $0x464] ss:$16 sps:$4 sm:$0xff]  }
  0x71   :  { %v3172_v18 = vld [vmem:[#allocation5 + $0x460] ss:$16 sps:$4 sm:$0xff]   ;;  %v3180_v20 = vld [vmem:[#allocation5 + $0x484] ss:$16 sps:$4 sm:$0xff]  }
  0x72   :  { %1331 = vmatpush1.bf16.msra.mxu1 %v3110_v38  ;;  %v3178_v22 = vld [vmem:[#allocation5 + $0x480] ss:$16 sps:$4 sm:$0xff]   ;;  %v3186_v24 = vld [vmem:[#allocation5 + $0x4a4] ss:$16 sps:$4 sm:$0xff]   ;;  %v3207_v38 = vld [vmem:[#allocation5 + $0x10c] ss:$16 sps:$4 sm:$0xff]  }
  0x73   :  { %1374 = vmatpush1.bf16.msra.mxu0 %v3111_v39  ;;  %1332 = vmatprep.subr.bf16.mxu1 %v3112_v40  ;;  %v3184_v26 = vld [vmem:[#allocation5 + $0x4a0] ss:$16 sps:$4 sm:$0xff]   ;;  %v3192_v28 = vld [vmem:[#allocation5 + $0x4c4] ss:$16 sps:$4 sm:$0xff]   ;;  %v3205_v40 = vld [vmem:[#allocation5 + $0x108] ss:$16 sps:$4 sm:$0xff]  }
  0x74   :  { %1375 = vmatprep.subr.bf16.mxu0 %v3114_v41  ;;  %v3190_v30 = vld [vmem:[#allocation5 + $0x4c0] ss:$16 sps:$4 sm:$0xff]   ;;  %v3198_v32 = vld [vmem:[#allocation5 + $0x4e4] ss:$16 sps:$4 sm:$0xff]  }
  0x75   :  { %v3196_v35 = vld [vmem:[#allocation5 + $0x4e0] ss:$16 sps:$4 sm:$0xff]   ;;  %v3204_v37 = vld [vmem:[#allocation5 + $0x504] ss:$16 sps:$4 sm:$0xff]  }
  0x76   :  { %1333 = vmatpush1.bf16.msra.mxu1 %v3116_v42  ;;  %v3202_v39 = vld [vmem:[#allocation5 + $0x500] ss:$16 sps:$4 sm:$0xff]   ;;  %v3210_v41 = vld [vmem:[#allocation5 + $0x524] ss:$16 sps:$4 sm:$0xff]   ;;  %v3213_v42 = vld [vmem:[#allocation5 + $0x12c] ss:$16 sps:$4 sm:$0xff]  }
  0x77   :  { %1376 = vmatpush1.bf16.msra.mxu0 %v3117_v43  ;;  %1334 = vmatprep.subr.bf16.mxu1 %v3118_v44  ;;  %v3208_v43 = vld [vmem:[#allocation5 + $0x520] ss:$16 sps:$4 sm:$0xff]   ;;  %v3211_v44 = vld [vmem:[#allocation5 + $0x128] ss:$16 sps:$4 sm:$0xff]  }
  0x78   :  { %1377 = vmatprep.subr.bf16.mxu0 %v3120_v45  ;;  %v3216_v45 = vld [vmem:[#allocation5 + $0x544] ss:$16 sps:$4 sm:$0xff]  }
  0x7a   :  { %1335 = vmatpush1.bf16.msra.mxu1 %v3122_v46  ;;  %v3219_v46 = vld [vmem:[#allocation5 + $0x14c] ss:$16 sps:$4 sm:$0xff]  }
  0x7b   :  { %1378 = vmatpush1.bf16.msra.mxu0 %v3123_v47  ;;  %1336 = vmatprep.subr.bf16.mxu1 %v3124_v48  ;;  %v3214_v47 = vld [vmem:[#allocation5 + $0x540] ss:$16 sps:$4 sm:$0xff]   ;;  %v3217_v48 = vld [vmem:[#allocation5 + $0x148] ss:$16 sps:$4 sm:$0xff]  }
  0x7c   :  { %1379 = vmatprep.subr.bf16.mxu0 %v3126_v50  ;;  %v3225_v50 = vld [vmem:[#allocation5 + $0x16c] ss:$16 sps:$4 sm:$0xff]  }
  0x7e   :  { %1337 = vmatpush1.bf16.msra.mxu1 %v3128_v52  ;;  %v3220_v52 = vld [vmem:[#allocation5 + $0x560] ss:$16 sps:$4 sm:$0xff]  }
  0x7f   :  { %1380 = vmatpush1.bf16.msra.mxu0 %v3129_v53  ;;  %1338 = vmatprep.subr.bf16.mxu1 %v3130_v54  ;;  %v3223_v53 = vld [vmem:[#allocation5 + $0x168] ss:$16 sps:$4 sm:$0xff]   ;;  %v3228_v54 = vld [vmem:[#allocation5 + $0x584] ss:$16 sps:$4 sm:$0xff]  }
  0x80   :  { %1381 = vmatprep.subr.bf16.mxu0 %v3132_v55  ;;  %v3231_v55 = vld [vmem:[#allocation5 + $0x18c] ss:$16 sps:$4 sm:$0xff]  }
  0x82   :  { %1339 = vmatpush1.bf16.msra.mxu1 %v3134_v56  ;;  %v3226_v56 = vld [vmem:[#allocation5 + $0x580] ss:$16 sps:$4 sm:$0xff]  }
  0x83   :  { %1382 = vmatpush1.bf16.msra.mxu0 %v3135_v57  ;;  %1340 = vmatprep.subr.bf16.mxu1 %v3136_v58  ;;  %v3229_v57 = vld [vmem:[#allocation5 + $0x188] ss:$16 sps:$4 sm:$0xff]   ;;  %v3234_v58 = vld [vmem:[#allocation5 + $0x5a4] ss:$16 sps:$4 sm:$0xff]  }
  0x84   :  { %1383 = vmatprep.subr.bf16.mxu0 %v3138_v59  ;;  %v3237_v59 = vld [vmem:[#allocation5 + $0x1ac] ss:$16 sps:$4 sm:$0xff]  }
  0x86   :  { %1341 = vmatpush1.bf16.msra.mxu1 %v3140_v60  ;;  %v3232_v60 = vld [vmem:[#allocation5 + $0x5a0] ss:$16 sps:$4 sm:$0xff]  }
  0x87   :  { %1384 = vmatpush1.bf16.msra.mxu0 %v3141_v61  ;;  %1342 = vmatprep.subr.bf16.mxu1 %v3142_v62  ;;  %v3235_v61 = vld [vmem:[#allocation5 + $0x1a8] ss:$16 sps:$4 sm:$0xff]   ;;  %v3240_v62 = vld [vmem:[#allocation5 + $0x5c4] ss:$16 sps:$4 sm:$0xff]  }
  0x88   :  { %1385 = vmatprep.subr.bf16.mxu0 %v3144_v63  ;;  %v3243_v63 = vld [vmem:[#allocation5 + $0x1cc] ss:$16 sps:$4 sm:$0xff]  }
  0x8a   :  { %1343 = vmatpush1.bf16.msra.mxu1 %v3146_v0  ;;  %v3238_v0 = vld [vmem:[#allocation5 + $0x5c0] ss:$16 sps:$4 sm:$0xff]  }
  0x8b   :  { %1386 = vmatpush1.bf16.msra.mxu0 %v3147_v1  ;;  %1484 = vmatprep.subr.bf16.mxu1 %v3159_v3  ;;  %v3241_v1 = vld [vmem:[#allocation5 + $0x1c8] ss:$16 sps:$4 sm:$0xff]   ;;  %v3249_v3 = vld [vmem:[#allocation5 + $0x1ec] ss:$16 sps:$4 sm:$0xff]  }
  0x8c   :  { %1398 = vmatprep.subr.bf16.mxu0 %v3156_v2  ;;  %v3246_v2 = vld [vmem:[#allocation5 + $0x5e4] ss:$16 sps:$4 sm:$0xff]  }
  0x8d   :  { %1345 = vmatmul.mubr.bf16.vlgmr.msra.gmra.mrb[0].mxu1 %v3725_v4 }
  0x8e   :  { %1388 = vmatmul.mubr.bf16.vlgmr.msra.gmra.mrb[0].mxu0 %v3727_v5  ;;  %1485 = vmatpush1.bf16.msra.mxu1 %v3157_v7  ;;  %v3247_v7 = vld [vmem:[#allocation5 + $0x1e8] ss:$16 sps:$4 sm:$0xff]  }
  0x8f   :  { %1399 = vmatpush1.bf16.msra.mxu0 %v3154_v6  ;;  %1486 = vmatprep.subr.bf16.mxu1 %v3165_v9  ;;  %v3244_v6 = vld [vmem:[#allocation5 + $0x5e0] ss:$16 sps:$4 sm:$0xff]   ;;  %v3261_v9 = vld [vmem:[#allocation5 + $0x604] ss:$16 sps:$4 sm:$0xff]  }
  0x90   :  { %1400 = vmatprep.subr.bf16.mxu0 %v3162_v8  ;;  %1516 = vmatprep.mubr.bf16.mxu1 %v3150_v49  ;;  %v3222_v49 = vld [vmem:[#allocation5 + $0x564] ss:$16 sps:$4 sm:$0xff]   ;;  %v3255_v8 = vld [vmem:[#allocation5 + $0x20c] ss:$16 sps:$4 sm:$0xff]  }
  0x91   :  { %1430 = vmatprep.mubr.bf16.mxu0 %v3731_v34 }
  0x92   :  { %1487 = vmatpush1.bf16.msra.mxu1 %v3163_v11  ;;  %v3253_v11 = vld [vmem:[#allocation5 + $0x208] ss:$16 sps:$4 sm:$0xff]  }
  0x93   :  { %1401 = vmatpush1.bf16.msra.mxu0 %v3160_v10  ;;  %1488 = vmatprep.subr.bf16.mxu1 %v3171_v13  ;;  %v3734_v10 = vld [vmem:[#allocation2 + $0x10] ss:$28 sps:$4 sm:$0xff]   ;;  %v3258_v13 = vld [vmem:[#allocation5 + $0x22c] ss:$16 sps:$4 sm:$0xff]  }
  0x94   :  { %1402 = vmatprep.subr.bf16.mxu0 %v3168_v12  ;;  %v3259_v12 = vld [vmem:[#allocation5 + $0x600] ss:$16 sps:$4 sm:$0xff]  }
  0x96   :  { %1489 = vmatpush1.bf16.msra.mxu1 %v3169_v15  ;;  %v3349_v15 = vld [vmem:[#allocation5 + $0x60c] ss:$16 sps:$4 sm:$0xff]  }
  0x97   :  { %1403 = vmatpush1.bf16.msra.mxu0 %v3166_v14  ;;  %1490 = vmatprep.subr.bf16.mxu1 %v3177_v17  ;;  %v3256_v14 = vld [vmem:[#allocation5 + $0x228] ss:$16 sps:$4 sm:$0xff]   ;;  %v3618_v17 = vmov 0  }
  0x98   :  { %1404 = vmatprep.subr.bf16.mxu0 %v3174_v16  ;;  %v3264_v16 = vld [vmem:[#allocation5 + $0x24c] ss:$16 sps:$4 sm:$0xff]  }
  0x9a   :  { %1491 = vmatpush1.bf16.msra.mxu1 %v3175_v19  ;;  %v3268_v19 = vld [vmem:[#allocation5 + $0x26c] ss:$16 sps:$4 sm:$0xff]  }
  0x9b   :  { %1405 = vmatpush1.bf16.msra.mxu0 %v3172_v18  ;;  %1492 = vmatprep.subr.bf16.mxu1 %v3183_v21  ;;  %v3262_v18 = vld [vmem:[#allocation5 + $0x248] ss:$16 sps:$4 sm:$0xff]  }
  0x9c   :  { %1406 = vmatprep.subr.bf16.mxu0 %v3180_v20  ;;  %v3265_v20 = vld [vmem:[#allocation2 + $0x18] ss:$28 sps:$4 sm:$0xff]   ;;  %v3266_v21 = vld [vmem:[#allocation5 + $0x268] ss:$16 sps:$4 sm:$0xff]  }
  0x9e   :  { %1493 = vmatpush1.bf16.msra.mxu1 %v3181_v23  ;;  %v3271_v23 = vld [vmem:[#allocation5 + $0x28c] ss:$16 sps:$4 sm:$0xff]  }
  0x9f   :  { %1407 = vmatpush1.bf16.msra.mxu0 %v3178_v22  ;;  %1494 = vmatprep.subr.bf16.mxu1 %v3189_v25  ;;  %v3347_v22 = vld [vmem:[#allocation5 + $0x608] ss:$16 sps:$4 sm:$0xff]   ;;  %v3277_v25 = vld [vmem:[#allocation5 + $0x2cc] ss:$16 sps:$4 sm:$0xff]  }
  0xa0   :  { %1408 = vmatprep.subr.bf16.mxu0 %v3186_v24  ;;  %v3274_v24 = vld [vmem:[#allocation5 + $0x2ac] ss:$16 sps:$4 sm:$0xff]  }
  0xa2   :  { %1495 = vmatpush1.bf16.msra.mxu1 %v3187_v27  ;;  %v3280_v27 = vld [vmem:[#allocation5 + $0x2ec] ss:$16 sps:$4 sm:$0xff]  }
  0xa3   :  { %1409 = vmatpush1.bf16.msra.mxu0 %v3184_v26  ;;  %1496 = vmatprep.subr.bf16.mxu1 %v3195_v29  ;;  %v3275_v26 = vld [vmem:[#allocation5 + $0x2c8] ss:$16 sps:$4 sm:$0xff]   ;;  %v3283_v29 = vld [vmem:[#allocation5 + $0x30c] ss:$16 sps:$4 sm:$0xff]  }
  0xa4   :  { %1410 = vmatprep.subr.bf16.mxu0 %v3192_v28  ;;  %v3278_v28 = vld [vmem:[#allocation5 + $0x2e8] ss:$16 sps:$4 sm:$0xff]  }
  0xa6   :  { %1497 = vmatpush1.bf16.msra.mxu1 %v3193_v31  ;;  %v3286_v31 = vld [vmem:[#allocation5 + $0x32c] ss:$16 sps:$4 sm:$0xff]  }
  0xa7   :  { %1411 = vmatpush1.bf16.msra.mxu0 %v3190_v30  ;;  %1498 = vmatprep.subr.bf16.mxu1 %v3201_v33  ;;  %v3281_v30 = vld [vmem:[#allocation5 + $0x308] ss:$16 sps:$4 sm:$0xff]   ;;  %v3289_v33 = vld [vmem:[#allocation5 + $0x34c] ss:$16 sps:$4 sm:$0xff]  }
  0xa8   :  { %1412 = vmatprep.subr.bf16.mxu0 %v3198_v32  ;;  %v3284_v32 = vld [vmem:[#allocation5 + $0x328] ss:$16 sps:$4 sm:$0xff]  }
  0xaa   :  { %1499 = vmatpush1.bf16.msra.mxu1 %v3199_v36  ;;  %v3292_v36 = vld [vmem:[#allocation5 + $0x36c] ss:$16 sps:$4 sm:$0xff]  }
  0xab   :  { %1413 = vmatpush1.bf16.msra.mxu0 %v3196_v35  ;;  %1500 = vmatprep.subr.bf16.mxu1 %v3207_v38  ;;  %v3287_v35 = vld [vmem:[#allocation5 + $0x348] ss:$16 sps:$4 sm:$0xff]   ;;  %v3295_v38 = vld [vmem:[#allocation5 + $0x38c] ss:$16 sps:$4 sm:$0xff]  }
  0xac   :  { %1414 = vmatprep.subr.bf16.mxu0 %v3204_v37  ;;  %v3290_v37 = vld [vmem:[#allocation5 + $0x368] ss:$16 sps:$4 sm:$0xff]  }
  0xae   :  { %1501 = vmatpush1.bf16.msra.mxu1 %v3205_v40  ;;  %v3298_v40 = vld [vmem:[#allocation5 + $0x3ac] ss:$16 sps:$4 sm:$0xff]  }
  0xaf   :  { %1415 = vmatpush1.bf16.msra.mxu0 %v3202_v39  ;;  %1502 = vmatprep.subr.bf16.mxu1 %v3213_v42  ;;  %v3293_v39 = vld [vmem:[#allocation5 + $0x388] ss:$16 sps:$4 sm:$0xff]   ;;  %v3301_v42 = vld [vmem:[#allocation5 + $0x3cc] ss:$16 sps:$4 sm:$0xff]  }
  0xb0   :  { %1416 = vmatprep.subr.bf16.mxu0 %v3210_v41  ;;  %v3296_v41 = vld [vmem:[#allocation5 + $0x3a8] ss:$16 sps:$4 sm:$0xff]  }
  0xb2   :  { %1503 = vmatpush1.bf16.msra.mxu1 %v3211_v44  ;;  %v3304_v44 = vld [vmem:[#allocation5 + $0x3ec] ss:$16 sps:$4 sm:$0xff]  }
  0xb3   :  { %1417 = vmatpush1.bf16.msra.mxu0 %v3208_v43  ;;  %1504 = vmatprep.subr.bf16.mxu1 %v3219_v46  ;;  %v3299_v43 = vld [vmem:[#allocation5 + $0x3c8] ss:$16 sps:$4 sm:$0xff]   ;;  %v3307_v46 = vld [vmem:[#allocation5 + $0x40c] ss:$16 sps:$4 sm:$0xff]  }
  0xb4   :  { %1418 = vmatprep.subr.bf16.mxu0 %v3216_v45  ;;  %v3302_v45 = vld [vmem:[#allocation5 + $0x3e8] ss:$16 sps:$4 sm:$0xff]  }
  0xb6   :  { %1505 = vmatpush1.bf16.msra.mxu1 %v3217_v48  ;;  %v3310_v48 = vld [vmem:[#allocation5 + $0x42c] ss:$16 sps:$4 sm:$0xff]  }
  0xb7   :  { %1419 = vmatpush1.bf16.msra.mxu0 %v3214_v47  ;;  %1506 = vmatprep.subr.bf16.mxu1 %v3225_v50  ;;  %v3305_v47 = vld [vmem:[#allocation5 + $0x408] ss:$16 sps:$4 sm:$0xff]   ;;  %v3313_v50 = vld [vmem:[#allocation5 + $0x44c] ss:$16 sps:$4 sm:$0xff]  }
  0xb8   :  { %1420 = vmatprep.subr.bf16.mxu0 %v3222_v49  ;;  %v3308_v49 = vld [vmem:[#allocation5 + $0x428] ss:$16 sps:$4 sm:$0xff]  }
  0xba   :  { %1507 = vmatpush1.bf16.msra.mxu1 %v3223_v53  ;;  %v3316_v53 = vld [vmem:[#allocation5 + $0x46c] ss:$16 sps:$4 sm:$0xff]  }
  0xbb   :  { %1421 = vmatpush1.bf16.msra.mxu0 %v3220_v52  ;;  %1508 = vmatprep.subr.bf16.mxu1 %v3231_v55  ;;  %v3311_v52 = vld [vmem:[#allocation5 + $0x448] ss:$16 sps:$4 sm:$0xff]   ;;  %v3319_v55 = vld [vmem:[#allocation5 + $0x48c] ss:$16 sps:$4 sm:$0xff]  }
  0xbc   :  { %1422 = vmatprep.subr.bf16.mxu0 %v3228_v54  ;;  %v3314_v54 = vld [vmem:[#allocation5 + $0x468] ss:$16 sps:$4 sm:$0xff]  }
  0xbe   :  { %1509 = vmatpush1.bf16.msra.mxu1 %v3229_v57  ;;  %v3322_v57 = vld [vmem:[#allocation5 + $0x4ac] ss:$16 sps:$4 sm:$0xff]  }
  0xbf   :  { %1423 = vmatpush1.bf16.msra.mxu0 %v3226_v56  ;;  %1510 = vmatprep.subr.bf16.mxu1 %v3237_v59  ;;  %v3317_v56 = vld [vmem:[#allocation5 + $0x488] ss:$16 sps:$4 sm:$0xff]   ;;  %v3328_v59 = vld [vmem:[#allocation5 + $0x4ec] ss:$16 sps:$4 sm:$0xff]  }
  0xc0   :  { %1424 = vmatprep.subr.bf16.mxu0 %v3234_v58  ;;  %v3325_v58 = vld [vmem:[#allocation5 + $0x4cc] ss:$16 sps:$4 sm:$0xff]  }
  0xc2   :  { %1511 = vmatpush1.bf16.msra.mxu1 %v3235_v61  ;;  %v3331_v61 = vld [vmem:[#allocation5 + $0x50c] ss:$16 sps:$4 sm:$0xff]  }
  0xc3   :  { %1425 = vmatpush1.bf16.msra.mxu0 %v3232_v60  ;;  %1512 = vmatprep.subr.bf16.mxu1 %v3243_v63  ;;  %v3326_v60 = vld [vmem:[#allocation5 + $0x4e8] ss:$16 sps:$4 sm:$0xff]   ;;  %v3334_v63 = vld [vmem:[#allocation5 + $0x52c] ss:$16 sps:$4 sm:$0xff]  }
  0xc4   :  { %1426 = vmatprep.subr.bf16.mxu0 %v3240_v62  ;;  %v3329_v62 = vld [vmem:[#allocation5 + $0x508] ss:$16 sps:$4 sm:$0xff]  }
  0xc6   :  { %1513 = vmatpush1.bf16.msra.mxu1 %v3241_v1  ;;  %v3337_v1 = vld [vmem:[#allocation5 + $0x54c] ss:$16 sps:$4 sm:$0xff]  }
  0xc7   :  { %1427 = vmatpush1.bf16.msra.mxu0 %v3238_v0  ;;  %1514 = vmatprep.subr.bf16.mxu1 %v3249_v3  ;;  %v3332_v0 = vld [vmem:[#allocation5 + $0x528] ss:$16 sps:$4 sm:$0xff]   ;;  %v3340_v3 = vld [vmem:[#allocation5 + $0x56c] ss:$16 sps:$4 sm:$0xff]  }
  0xc8   :  { %1428 = vmatprep.subr.bf16.mxu0 %v3246_v2  ;;  %v3335_v2 = vld [vmem:[#allocation5 + $0x548] ss:$16 sps:$4 sm:$0xff]  }
  0xca   :  { %1515 = vmatpush1.bf16.msra.mxu1 %v3247_v7  ;;  %v3343_v7 = vld [vmem:[#allocation5 + $0x58c] ss:$16 sps:$4 sm:$0xff]  }
  0xcb   :  { %1429 = vmatpush1.bf16.msra.mxu0 %v3244_v6  ;;  %1527 = vmatprep.subr.bf16.mxu1 %v3255_v8  ;;  %v3338_v6 = vld [vmem:[#allocation5 + $0x568] ss:$16 sps:$4 sm:$0xff]  }
  0xcc   :  { %1441 = vmatprep.subr.bf16.mxu0 %v3261_v9  ;;  %v3341_v8 = vld [vmem:[#allocation5 + $0x588] ss:$16 sps:$4 sm:$0xff]   ;;  %v3346_v9 = vld [vmem:[#allocation5 + $0x5ac] ss:$16 sps:$4 sm:$0xff]  }
  0xcd   :  { %1517 = vmatmul.mubr.bf16.vlgmr.msra.gmra.mrb[4].mxu1 %v3725_v4  ;;  %v3269_v4 = vld [vmem:[#allocation5 + $0x288] ss:$16 sps:$4 sm:$0xff]  }
  0xce   :  { %1431 = vmatmul.mubr.bf16.vlgmr.msra.gmra.mrb[0].mxu0 %v3734_v10  ;;  %1528 = vmatpush1.bf16.msra.mxu1 %v3253_v11  ;;  %v3344_v11 = vld [vmem:[#allocation5 + $0x5a8] ss:$16 sps:$4 sm:$0xff]  }
  0xcf   :  { %1442 = vmatpush1.bf16.msra.mxu0 %v3259_v12  ;;  %1529 = vmatprep.subr.bf16.mxu1 %v3258_v13  ;;  %v3352_v12 = vld [vmem:[#allocation5 + $0x5cc] ss:$16 sps:$4 sm:$0xff]   ;;  %v3350_v13 = vld [vmem:[#allocation5 + $0x5c8] ss:$16 sps:$4 sm:$0xff]  }
  0xd0   :  { %1473 = vmatprep.mubr.bf16.mxu0 %v3618_v17  ;;  %1559 = vmatprep.mubr.bf16.mxu1 %v3722_v51  ;;  %v3272_v51 = vld [vmem:[#allocation5 + $0x2a8] ss:$16 sps:$4 sm:$0xff]  }
  0xd1   :  { %1613 = vmatprep.subr.bf16.mxu0 %v3349_v15  ;;  %v3353_v15 = vld [vmem:[#allocation5 + $0x5e8] ss:$16 sps:$4 sm:$0xff]  }
  0xd2   :  { %1530 = vmatpush1.bf16.msra.mxu1 %v3256_v14  ;;  %v3355_v14 = vld [vmem:[#allocation5 + $0x5ec] ss:$16 sps:$4 sm:$0xff]  }
  0xd3   :  { %1531 = vmatprep.subr.bf16.mxu1 %v3264_v16 }
  0xd6   :  { %1532 = vmatpush1.bf16.msra.mxu1 %v3262_v18 }
  0xd7   :  { %1533 = vmatprep.subr.bf16.mxu1 %v3268_v19 }
  0xda   :  { %2902 = vmatmul.mubr.msk.bf16.vlgmr.msra.gmra.mrb[0].mxu0 %vm1308_vm0, %v3265_v20  ;;  %1534 = vmatpush1.bf16.msra.mxu1 %v3266_v21  ;;  %v3356_v21 = vld [vmem:[#allocation7] ss:$8 sps:$4 sm:$0xff]  }
  0xdb   :  { %1614 = vmatpush1.bf16.msra.mxu0 %v3347_v22  ;;  %1535 = vmatprep.subr.bf16.mxu1 %v3271_v23 }
  0xdc   :  { %1645 = vmatprep.mubr.bf16.mxu0 %v3618_v17 }
  0xde   :  { %1536 = vmatpush1.bf16.msra.mxu1 %v3269_v4 }
  0xdf   :  { %1537 = vmatprep.subr.bf16.mxu1 %v3274_v24 }
  0xe2   :  { %2903 = vmatmul.mubr.msk.bf16.vlgmr.msra.gmra.mrb[4].mxu0 %vm1308_vm0, %v3265_v20  ;;  %1538 = vmatpush1.bf16.msra.mxu1 %v3272_v51  ;;  %v3358_v20 = vld [vmem:[#allocation7 + $0x4] ss:$8 sps:$4 sm:$0xff]  }
  0xe3   :  { %1539 = vmatprep.subr.bf16.mxu1 %v3277_v25  ;;  %2276 = vmatprep.subr.bf16.mxu0 %v3358_v20  ;;  %v3361_v25 = vld [vmem:[#allocation7 + $0x14] ss:$8 sps:$4 sm:$0xff]   ;;  %v3374_v20 = vld [vmem:[#allocation7 + $0x60] ss:$8 sps:$4 sm:$0xff]  }
  0xe4   :  { %2277 = vmatpush1.bf16.msra.mxu0 %v3356_v21 }
  0xe5   :  { %2278 = vmatprep.subr.bf16.mxu0 %v3361_v25 }
  0xe6   :  { %1540 = vmatpush1.bf16.msra.mxu1 %v3275_v26 }
  0xe7   :  { %1541 = vmatprep.subr.bf16.mxu1 %v3280_v27 }
  0xea   :  { %1542 = vmatpush1.bf16.msra.mxu1 %v3278_v28 }
  0xeb   :  { %1543 = vmatprep.subr.bf16.mxu1 %v3283_v29 }
  0xee   :  { %1544 = vmatpush1.bf16.msra.mxu1 %v3281_v30 }
  0xef   :  { %1545 = vmatprep.subr.bf16.mxu1 %v3286_v31 }
  0xf2   :  { %1546 = vmatpush1.bf16.msra.mxu1 %v3284_v32 }
  0xf3   :  { %1547 = vmatprep.subr.bf16.mxu1 %v3289_v33 }
  0xf6   :  { %1548 = vmatpush1.bf16.msra.mxu1 %v3287_v35 }
  0xf7   :  { %1549 = vmatprep.subr.bf16.mxu1 %v3292_v36  ;;  %v3364_v36 = vld [vmem:[#allocation7 + $0x24] ss:$8 sps:$4 sm:$0xff]  }
  0xfa   :  { %1550 = vmatpush1.bf16.msra.mxu1 %v3290_v37 }
  0xfb   :  { %1551 = vmatprep.subr.bf16.mxu1 %v3295_v38 }
  0xfe   :  { %1552 = vmatpush1.bf16.msra.mxu1 %v3293_v39  ;;  %v3362_v39 = vld [vmem:[#allocation7 + $0x20] ss:$8 sps:$4 sm:$0xff]  }
  0xff   :  { %1553 = vmatprep.subr.bf16.mxu1 %v3298_v40 }
 0x102   :  { %1554 = vmatpush1.bf16.msra.mxu1 %v3296_v41 }
 0x103   :  { %1555 = vmatprep.subr.bf16.mxu1 %v3301_v42 }
 0x106   :  { %1556 = vmatpush1.bf16.msra.mxu1 %v3299_v43 }
 0x107   :  { %1557 = vmatprep.subr.bf16.mxu1 %v3304_v44 }
 0x10a   :  { %1558 = vmatpush1.bf16.msra.mxu1 %v3302_v45 }
 0x10b   :  { %1570 = vmatprep.subr.bf16.mxu1 %v3307_v46 }
 0x10d   :  { %1560 = vmatmul.mubr.bf16.vlgmr.msra.gmra.mrb[4].mxu1 %v3727_v5  ;;  %v3320_v5 = vld [vmem:[#allocation5 + $0x4a8] ss:$16 sps:$4 sm:$0xff]  }
 0x10e   :  { %1571 = vmatpush1.bf16.msra.mxu1 %v3305_v47  ;;  %1602 = vmatprep.mubr.bf16.mxu1 %v3731_v34  ;;  %v3323_v34 = vld [vmem:[#allocation5 + $0x4c8] ss:$16 sps:$4 sm:$0xff]  }
 0x10f   :  { %1572 = vmatprep.subr.bf16.mxu1 %v3310_v48 }
 0x112   :  { %1573 = vmatpush1.bf16.msra.mxu1 %v3308_v49  ;;  %v3367_v49 = vld [vmem:[#allocation7 + $0x34] ss:$8 sps:$4 sm:$0xff]  }
 0x113   :  { %1574 = vmatprep.subr.bf16.mxu1 %v3313_v50 }
 0x116   :  { %1575 = vmatpush1.bf16.msra.mxu1 %v3311_v52 }
 0x117   :  { %1576 = vmatprep.subr.bf16.mxu1 %v3316_v53 }
 0x11a   :  { %1577 = vmatpush1.bf16.msra.mxu1 %v3314_v54  ;;  %v3365_v54 = vld [vmem:[#allocation7 + $0x30] ss:$8 sps:$4 sm:$0xff]  }
 0x11b   :  { %1578 = vmatprep.subr.bf16.mxu1 %v3319_v55 }
 0x11e   :  { %1579 = vmatpush1.bf16.msra.mxu1 %v3317_v56 }
 0x11f   :  { %1580 = vmatprep.subr.bf16.mxu1 %v3322_v57 }
 0x122   :  { %1581 = vmatpush1.bf16.msra.mxu1 %v3320_v5 }
 0x123   :  { %1582 = vmatprep.subr.bf16.mxu1 %v3325_v58 }
 0x126   :  { %1583 = vmatpush1.bf16.msra.mxu1 %v3323_v34 }
 0x127   :  { %1584 = vmatprep.subr.bf16.mxu1 %v3328_v59  ;;  %v3370_v59 = vld [vmem:[#allocation7 + $0x44] ss:$8 sps:$4 sm:$0xff]  }
 0x12a   :  { %1585 = vmatpush1.bf16.msra.mxu1 %v3326_v60 }
 0x12b   :  { %1586 = vmatprep.subr.bf16.mxu1 %v3331_v61 }
 0x12e   :  { %1587 = vmatpush1.bf16.msra.mxu1 %v3329_v62  ;;  %v3368_v62 = vld [vmem:[#allocation7 + $0x40] ss:$8 sps:$4 sm:$0xff]  }
 0x12f   :  { %1588 = vmatprep.subr.bf16.mxu1 %v3334_v63 }
 0x132   :  { %1589 = vmatpush1.bf16.msra.mxu1 %v3332_v0 }
 0x133   :  { %1590 = vmatprep.subr.bf16.mxu1 %v3337_v1 }
 0x136   :  { %1591 = vmatpush1.bf16.msra.mxu1 %v3335_v2 }
 0x137   :  { %1592 = vmatprep.subr.bf16.mxu1 %v3340_v3 }
 0x13a   :  { %1593 = vmatpush1.bf16.msra.mxu1 %v3338_v6 }
 0x13b   :  { %1594 = vmatprep.subr.bf16.mxu1 %v3343_v7  ;;  %v3373_v7 = vld [vmem:[#allocation7 + $0x54] ss:$8 sps:$4 sm:$0xff]  }
 0x13e   :  { %1595 = vmatpush1.bf16.msra.mxu1 %v3341_v8 }
 0x13f   :  { %1596 = vmatprep.subr.bf16.mxu1 %v3346_v9 }
 0x142   :  { %1597 = vmatpush1.bf16.msra.mxu1 %v3344_v11  ;;  %v3371_v11 = vld [vmem:[#allocation7 + $0x50] ss:$8 sps:$4 sm:$0xff]  }
 0x143   :  { %1598 = vmatprep.subr.bf16.mxu1 %v3352_v12 }
 0x146   :  { %1599 = vmatpush1.bf16.msra.mxu1 %v3350_v13 }
 0x147   :  { %1600 = vmatprep.subr.bf16.mxu1 %v3355_v14 }
 0x14a   :  { %1601 = vmatpush1.bf16.msra.mxu1 %v3353_v15 }
 0x14d   :  { %1603 = vmatmul.mubr.bf16.vlgmr.msra.gmra.mrb[4].mxu1 %v3734_v10  ;;  %v3359_v10 = vld [vmem:[#allocation7 + $0x10] ss:$8 sps:$4 sm:$0xff]  }
 0x14e   :  { %2279 = vmatpush1.bf16.msra.mxu0 %v3359_v10 }
 0x14f   :  { %2280 = vmatprep.subr.bf16.mxu0 %v3364_v36  ;;  %v3386_v36 = vld [vmem:[#allocation7 + $0xa0] ss:$8 sps:$4 sm:$0xff]  }
 0x152   :  { %2281 = vmatpush1.bf16.msra.mxu0 %v3362_v39  ;;  %v3391_v39 = vld [vmem:[#allocation7 + $0xb4] ss:$8 sps:$4 sm:$0xff]  }
 0x153   :  { %2282 = vmatprep.subr.bf16.mxu0 %v3367_v49  ;;  %v3398_v49 = vld [vmem:[#allocation7 + $0xe0] ss:$8 sps:$4 sm:$0xff]  }
 0x156   :  { %2283 = vmatpush1.bf16.msra.mxu0 %v3365_v54  ;;  %v3406_v54 = vld [vmem:[#allocation7 + $0x104] ss:$8 sps:$4 sm:$0xff]  }
 0x157   :  { %2284 = vmatprep.subr.bf16.mxu0 %v3370_v59 }
 0x15a   :  { %2285 = vmatpush1.bf16.msra.mxu0 %v3368_v62 }
 0x15b   :  { %2286 = vmatprep.subr.bf16.mxu0 %v3373_v7 }
 0x15e   :  { %2287 = vmatpush1.bf16.msra.mxu0 %v3371_v11 }
 0x160   :  { %v1346_v16 = vpop.f32.mrb[0].mxu1 }
 0x161   :  { %v1348_v17 = vpop.f32.mrb[1].mxu1 }
 0x162   :  { %v1350_v18 = vpop.f32.mrb[2].mxu1 }
 0x163   :  { %v1352_v19 = vpop.f32.mrb[3].mxu1 }
 0x1ad   :  { %v1475_v22 = vpop.f32.mrb[0].mxu0 }
 0x1ae   :  { %v3742_v23 = vadd.f32 %v1475_v22, %v1346_v16  ;;  %v1477_v4 = vpop.f32.mrb[1].mxu0 }
 0x1af   :  { %v3744_v24 = vadd.f32 %v1477_v4, %v1348_v17  ;;  %v1479_v51 = vpop.f32.mrb[2].mxu0 }
 0x1b0   :  { %v3746_v26 = vadd.f32 %v1479_v51, %v1350_v18  ;;  %v1481_v27 = vpop.f32.mrb[3].mxu0  ;;  %v1688_v29 = vmul.f32 %v3742_v23, %v3742_v23  ;;  %v3376_v18 = vld [vmem:[#allocation7 + $0x64] ss:$8 sps:$4 sm:$0xff]   ;;  %v3379_v51 = vld [vmem:[#allocation7 + $0x74] ss:$8 sps:$4 sm:$0xff]  }
 0x1b1   :  { %v3748_v28 = vadd.f32 %v1481_v27, %v1352_v19  ;;  %v1689_v32 = vmul.f32 %v3744_v24, %v3744_v24  ;;  %2288 = vmatprep.subr.bf16.mxu0 %v3376_v18  ;;  %v3377_v27 = vld [vmem:[#allocation7 + $0x70] ss:$8 sps:$4 sm:$0xff]  }
 0x1b2   :  { %v1656_v30 = vadd.f32 %v3746_v26, %v3742_v23  ;;  %v1692_v31 = vmul.f32 %v3746_v26, %v3746_v26  ;;  %2289 = vmatpush1.bf16.msra.mxu0 %v3374_v20 }
 0x1b3   :  { %v1663_v33 = vadd.f32 %v3748_v28, %v3744_v24  ;;  %v1693_v35 = vmul.f32 %v3748_v28, %v3748_v28  ;;  %2290 = vmatprep.subr.bf16.mxu0 %v3379_v51 }
 0x1b4   :  { %v1657_v37 = vrot.slane %v1656_v30, 4  ;;  %v1696_v38 = vadd.f32 %v1692_v31, %v1688_v29  ;;  %v3382_v29 = vld [vmem:[#allocation7 + $0x84] ss:$8 sps:$4 sm:$0xff]   ;;  %v3385_v31 = vld [vmem:[#allocation7 + $0x94] ss:$8 sps:$4 sm:$0xff]  }
 0x1b5   :  { %v1664_v40 = vrot.slane %v1663_v33, 4  ;;  %v1703_v41 = vadd.f32 %v1693_v35, %v1689_v32  ;;  %v3762_v42 = vpop.f32.mrb[4].mxu0  ;;  %v3383_v32 = vld [vmem:[#allocation7 + $0x90] ss:$8 sps:$4 sm:$0xff]  }
 0x1b6   :  { %v1658_v43 = vadd.f32 %v1657_v37, %v1656_v30  ;;  %v1697_v44 = vrot.slane %v1696_v38, 4  ;;  %v3764_v45 = vpop.f32.mrb[5].mxu0  ;;  %2291 = vmatpush1.bf16.msra.mxu0 %v3377_v27  ;;  %v3380_v30 = vld [vmem:[#allocation7 + $0x80] ss:$8 sps:$4 sm:$0xff]  }
 0x1b7   :  { %v1665_v46 = vadd.f32 %v1664_v40, %v1663_v33  ;;  %v1704_v47 = vrot.slane %v1703_v41, 4  ;;  %v3766_v48 = vpop.f32.mrb[6].mxu0  ;;  %2292 = vmatprep.subr.bf16.mxu0 %v3382_v29  ;;  %v3388_v33 = vld [vmem:[#allocation7 + $0xa4] ss:$8 sps:$4 sm:$0xff]   ;;  %v3389_v40 = vld [vmem:[#allocation7 + $0xb0] ss:$8 sps:$4 sm:$0xff]  }
 0x1b8   :  { %v1659_v50 = vrot.slane %v1658_v43, 2  ;;  %v1698_v52 = vadd.f32 %v1697_v44, %v1696_v38  ;;  %v3768_v53 = vpop.f32.mrb[7].mxu0  ;;  %v3397_v44 = vld [vmem:[#allocation7 + $0xd4] ss:$8 sps:$4 sm:$0xff]  }
 0x1b9   :  { %v1666_v55 = vrot.slane %v1665_v46, 2  ;;  %v1705_v56 = vadd.f32 %v1704_v47, %v1703_v41  ;;  %v3394_v41 = vld [vmem:[#allocation7 + $0xc4] ss:$8 sps:$4 sm:$0xff]  }
 0x1ba   :  { %v1660_v57 = vadd.f32 %v1659_v50, %v1658_v43  ;;  %v1699_v5 = vrot.slane %v1698_v52, 2  ;;  %2293 = vmatpush1.bf16.msra.mxu0 %v3380_v30  ;;  %v3392_v43 = vld [vmem:[#allocation7 + $0xc0] ss:$8 sps:$4 sm:$0xff]   ;;  %v3400_v47 = vld [vmem:[#allocation7 + $0xe4] ss:$8 sps:$4 sm:$0xff]  }
 0x1bb   :  { %v1667_v58 = vadd.f32 %v1666_v55, %v1665_v46  ;;  %v1706_v34 = vrot.slane %v1705_v56, 2  ;;  %2294 = vmatprep.subr.bf16.mxu0 %v3385_v31  ;;  %v3395_v46 = vld [vmem:[#allocation7 + $0xd0] ss:$8 sps:$4 sm:$0xff]   ;;  %v3403_v50 = vld [vmem:[#allocation7 + $0xf4] ss:$8 sps:$4 sm:$0xff]  }
 0x1bc   :  { %v1661_v60 = vrot.slane %v1660_v57, 1  ;;  %v1700_v61 = vadd.f32 %v1699_v5, %v1698_v52  ;;  %v3401_v52 = vld [vmem:[#allocation7 + $0xf0] ss:$8 sps:$4 sm:$0xff]  }
 0x1bd   :  { %v1668_v63 = vrot.slane %v1667_v58, 1  ;;  %v1707_v0 = vadd.f32 %v1706_v34, %v1705_v56 }
 0x1be   :  { %v1662_v1 = vadd.f32 %v1661_v60, %v1660_v57  ;;  %v1701_v2 = vrot.slane %v1700_v61, 1  ;;  %2295 = vmatpush1.bf16.msra.mxu0 %v3383_v32 }
 0x1bf   :  { %v1669_v3 = vadd.f32 %v1668_v63, %v1667_v58  ;;  %v1708_v6 = vrot.slane %v1707_v0, 1  ;;  %2296 = vmatprep.subr.bf16.mxu0 %v3388_v33 }
 0x1c0   :  { %v3770_v8 = vmul.f32 0.0625, %v1662_v1  ;;  %v1702_v9 = vadd.f32 %v1701_v2, %v1700_v61 }
 0x1c1   :  { %v3772_v12 = vmul.f32 0.0625, %v1669_v3  ;;  %v1709_v13 = vadd.f32 %v1708_v6, %v1707_v0 }
 0x1c2   :  { %v1724_v14 = vmul.f32 0.0625, %v1702_v9  ;;  %v1728_v15 = vmul.f32 %v3770_v8, %v3770_v8  ;;  %2297 = vmatpush1.bf16.msra.mxu0 %v3386_v36 }
 0x1c3   :  { %v1725_v16 = vmul.f32 0.0625, %v1709_v13  ;;  %v1729_v17 = vmul.f32 %v3772_v12, %v3772_v12  ;;  %2298 = vmatprep.subr.bf16.mxu0 %v3391_v39 }
 0x1c4   :  { %v1732_v19 = vsub.f32 %v1724_v14, %v1728_v15 }
 0x1c5   :  { %v1733_v21 = vsub.f32 %v1725_v16, %v1729_v17 }
 0x1c6   :  { %v1736_v22 = vmax.f32 %v1732_v19, 0.0  ;;  %2299 = vmatpush1.bf16.msra.mxu0 %v3389_v40 }
 0x1c7   :  { %v1737_v4 = vmax.f32 %v1733_v21, 0.0  ;;  %2300 = vmatprep.subr.bf16.mxu0 %v3394_v41 }
 0x1c8   :  { %v1741_v25 = vadd.f32 1e-05, %v1736_v22 }
 0x1c9   :  { %v1742_v10 = vadd.f32 1e-05, %v1737_v4 }
 0x1ca   :  { %3468 = vrsqrt.f32 %v1741_v25  ;;  %2301 = vmatpush1.bf16.msra.mxu0 %v3392_v43 }
 0x1cb   :  { %3470 = vrsqrt.f32 %v1742_v10  ;;  %2302 = vmatprep.subr.bf16.mxu0 %v3397_v44 }
 0x1ce   :  { %2303 = vmatpush1.bf16.msra.mxu0 %v3395_v46 }
 0x1cf   :  { %2304 = vmatprep.subr.bf16.mxu0 %v3400_v47 }
 0x1d2   :  { %2305 = vmatpush1.bf16.msra.mxu0 %v3398_v49 }
 0x1d3   :  { %2306 = vmatprep.subr.bf16.mxu0 %v3403_v50  ;;  %v3619_v50 = vmov 1966171168  }
 0x1d4   :  { %v3778_v35 = vpop.eup %3468 }
 0x1d5   :  { %v3780_v37 = vpop.eup %3470 }
 0x1d6   :  { %v1753_v38 = vcombine.low %v3778_v35, %v3780_v37  ;;  %2307 = vmatpush1.bf16.msra.mxu0 %v3401_v52  ;;  %v1756_v52 = vunpack.c.l.s4 %v3619_v50 }
 0x1d7   :  { %2319 = vmatprep.subr.bf16.mxu0 %v3406_v54  ;;  %v1758_v54 = vlaneseq }
 0x220   :  { %v1604_v55 = vpop.f32.mrb[4].mxu1 }
 0x221   :  { %v3785_v56 = vadd.f32 %v3762_v42, %v1604_v55  ;;  %v1606_v57 = vpop.f32.mrb[5].mxu1  ;;  %v1757_v55 = vunpack.c.0.s8 %v1756_v52 }
 0x222   :  { %v3788_v5 = vadd.f32 %v3764_v45, %v1606_v57  ;;  %v1608_v58 = vpop.f32.mrb[6].mxu1  ;;  %v1759_v57 = vshrl.u32 %v1758_v54, 7 }
 0x223   :  { %v3791_v34 = vadd.f32 %v3766_v48, %v1608_v58  ;;  %v1610_v59 = vpop.f32.mrb[7].mxu1  ;;  %v1690_v61 = vmul.f32 %v3785_v56, %v3785_v56 }
 0x224   :  { %v3794_v60 = vadd.f32 %v3768_v53, %v1610_v59  ;;  %v1691_v45 = vmul.f32 %v3788_v5, %v3788_v5  ;;  %v3808_v59 = vsub.s32 %v1757_v55, %v1759_v57 }
 0x225   :  { %v1670_v62 = vadd.f32 %v3791_v34, %v3785_v56  ;;  %v1694_v42 = vmul.f32 %v3791_v34, %v3791_v34 }
 0x226   :  { %v1677_v48 = vadd.f32 %v3794_v60, %v3788_v5  ;;  %v1695_v63 = vmul.f32 %v3794_v60, %v3794_v60 }
 0x227   :  { %v1671_v53 = vrot.slane %v1670_v62, 4  ;;  %v1710_v0 = vadd.f32 %v1694_v42, %v1690_v61  ;;  %v1761_v42 = vrot.slane %v1753_v38, %v3808_v59 }
 0x228   :  { %v1678_v1 = vrot.slane %v1677_v48, 4  ;;  %v1717_v2 = vadd.f32 %v1695_v63, %v1691_v45  ;;  %v1740_v63 = vld [vmem:[%s3883_s2] sm:$0xf] }
 0x229   :  { %v1672_v3 = vadd.f32 %v1671_v53, %v1670_v62  ;;  %v1711_v6 = vrot.slane %v1710_v0, 4  ;;  %v3818_v53 = vsub.s32 0, %v1759_v57 }
 0x22a   :  { %v1679_v7 = vadd.f32 %v1678_v1, %v1677_v48  ;;  %v1718_v9 = vrot.slane %v1717_v2, 4  ;;  %v3821_v1 = vsub.s32 1, %v1759_v57 }
 0x22b   :  { %v1673_v11 = vrot.slane %v1672_v3, 2  ;;  %v1712_v13 = vadd.f32 %v1711_v6, %v1710_v0 }
 0x22c   :  { %v1680_v14 = vrot.slane %v1679_v7, 2  ;;  %v1719_v15 = vadd.f32 %v1718_v9, %v1717_v2  ;;  %v1791_v2 = vsub.s32 2, %v1759_v57 }
 0x22d   :  { %v1674_v16 = vadd.f32 %v1673_v11, %v1672_v3  ;;  %v1713_v17 = vrot.slane %v1712_v13, 2  ;;  %v1795_v3 = vsub.s32 3, %v1759_v57 }
 0x22e   :  { %v1681_v18 = vadd.f32 %v1680_v14, %v1679_v7  ;;  %v1720_v19 = vrot.slane %v1719_v15, 2 }
 0x22f   :  { %v1675_v20 = vrot.slane %v1674_v16, 1  ;;  %v1714_v21 = vadd.f32 %v1713_v17, %v1712_v13 }
 0x230   :  { %v1682_v22 = vrot.slane %v1681_v18, 1  ;;  %v1721_v4 = vadd.f32 %v1720_v19, %v1719_v15 }
 0x231   :  { %v1676_v51 = vadd.f32 %v1675_v20, %v1674_v16  ;;  %v1715_v25 = vrot.slane %v1714_v21, 1 }
 0x232   :  { %v1683_v27 = vadd.f32 %v1682_v22, %v1681_v18  ;;  %v1722_v10 = vrot.slane %v1721_v4, 1 }
 0x233   :  { %v1686_v29 = vmul.f32 0.0625, %v1676_v51  ;;  %v1716_v30 = vadd.f32 %v1715_v25, %v1714_v21 }
 0x234   :  { %v1687_v31 = vmul.f32 0.0625, %v1683_v27  ;;  %v1723_v32 = vadd.f32 %v1722_v10, %v1721_v4 }
 0x235   :  { %v1726_v33 = vmul.f32 0.0625, %v1716_v30  ;;  %v1730_v36 = vmul.f32 %v1686_v29, %v1686_v29 }
 0x236   :  { %v1727_v39 = vmul.f32 0.0625, %v1723_v32  ;;  %v1731_v40 = vmul.f32 %v1687_v31, %v1687_v31 }
 0x237   :  { %v1734_v41 = vsub.f32 %v1726_v33, %v1730_v36 }
 0x238   :  { %v1735_v43 = vsub.f32 %v1727_v39, %v1731_v40 }
 0x239   :  { %v1738_v44 = vmax.f32 %v1734_v41, 0.0 }
 0x23a   :  { %v1739_v46 = vmax.f32 %v1735_v43, 0.0 }
 0x23b   :  { %v1743_v47 = vadd.f32 1e-05, %v1738_v44 }
 0x23c   :  { %v1744_v49 = vadd.f32 1e-05, %v1739_v46 }
 0x23d   :  { %3472 = vrsqrt.f32 %v1743_v47 }
 0x23e   :  { %3474 = vrsqrt.f32 %v1744_v49 }
 0x247   :  { %v3473_v58 = vpop.eup %3472 }
 0x248   :  { %v3475_v61 = vpop.eup %3474 }
 0x249   :  { %v1754_v62 = vcombine.low %v3473_v58, %v3475_v61  ;;  %v3404_v61 = vld [vmem:[#allocation7 + $0x100] ss:$8 sps:$4 sm:$0xff]  }
 0x24b   :  { %v1768_v45 = vrot.slane %v1754_v62, %v3808_v59 }
 0x24d   :  { %v1769_v48 = vcombine.low %v1761_v42, %v1768_v45 }
 0x24f   :  { %v1776_v0 = vrot.slane %v1769_v48, %v3808_v59  ;;  %v3409_v48 = vld [vmem:[#allocation7 + $0x114] ss:$8 sps:$4 sm:$0xff]  }
 0x251   :  { %v1778_v6 = vmul.f32 %v1776_v0, %v1740_v63 }
 0x253   :  { %v1784_v7 = vrot.slane %v1778_v6, %v3818_v53  ;;  %v1788_v35 = vrot.slane %v1778_v6, %v3821_v1  ;;  %v1792_v37 = vrot.slane %v1778_v6, %v1791_v2  ;;  %v1796_v38 = vrot.slane %v1778_v6, %v1795_v3  ;;  %v3410_v6 = vld [vmem:[#allocation7 + $0x120] ss:$8 sps:$4 sm:$0xff]  }
 0x255   :  { %v1801_v9 = vmul.f32 %v1784_v7, %v3770_v8  ;;  %v1802_v11 = vmul.f32 %v1788_v35, %v3772_v12  ;;  %v1803_v13 = vmul.f32 %v1792_v37, %v1686_v29  ;;  %v1804_v14 = vmul.f32 %v1796_v38, %v1687_v31 }
 0x256   :  { %v1842_v15 = vmul.f32 %v3794_v60, %v1796_v38  ;;  %v1836_v16 = vmul.f32 %v3744_v24, %v1788_v35  ;;  %v1840_v17 = vmul.f32 %v3748_v28, %v1788_v35  ;;  %v1835_v18 = vmul.f32 %v3742_v23, %v1784_v7  ;;  %v1779_v24 = vld [vmem:[%s3884_s3] sm:$0xf]  ;;  %v3413_v35 = vld [vmem:[#allocation7 + $0x130] ss:$8 sps:$4 sm:$0xff]  }
 0x257   :  { %v1809_v19 = vcombine.low %v1801_v9, %v1802_v11  ;;  %v1810_v20 = vcombine.low %v1803_v13, %v1804_v14  ;;  %v1839_v21 = vmul.f32 %v3746_v26, %v1784_v7  ;;  %v1838_v22 = vmul.f32 %v3788_v5, %v1796_v38  ;;  %v3415_v7 = vld [vmem:[#allocation7 + $0x134] ss:$8 sps:$4 sm:$0xff]   ;;  %v3416_v38 = vld [vmem:[#allocation7 + $0x140] ss:$8 sps:$4 sm:$0xff]   ;;  %v3419_v11 = vld [vmem:[#allocation7 + $0x150] ss:$8 sps:$4 sm:$0xff]  }
 0x258   :  { %v1837_v8 = vmul.f32 %v3785_v56, %v1792_v37  ;;  %v1841_v12 = vmul.f32 %v3791_v34, %v1792_v37  ;;  %v3418_v37 = vld [vmem:[#allocation7 + $0x144] ss:$8 sps:$4 sm:$0xff]   ;;  %v3421_v9 = vld [vmem:[#allocation7 + $0x154] ss:$8 sps:$4 sm:$0xff]   ;;  %v3422_v14 = vld [vmem:[#allocation7 + $0x160] ss:$8 sps:$4 sm:$0xff]  }
 0x259   :  { %v1817_v4 = vrot.slane %v1809_v19, %v3808_v59  ;;  %v1824_v60 = vrot.slane %v1810_v20, %v3808_v59  ;;  %v3424_v13 = vld [vmem:[#allocation7 + $0x164] ss:$8 sps:$4 sm:$0xff]   ;;  %v3433_v19 = vld [vmem:[#allocation7 + $0x194] ss:$8 sps:$4 sm:$0xff]   ;;  %v3431_v20 = vld [vmem:[#allocation7 + $0x190] ss:$8 sps:$4 sm:$0xff]  }
 0x25b   :  { %v1825_v51 = vcombine.low %v1817_v4, %v1824_v60  ;;  %v3442_v4 = vld [vmem:[#allocation7 + $0x1c4] ss:$8 sps:$4 sm:$0xff]   ;;  %v3440_v60 = vld [vmem:[#allocation7 + $0x1c0] ss:$8 sps:$4 sm:$0xff]  }
 0x25d   :  { %v1832_v23 = vrot.slane %v1825_v51, %v3808_v59  ;;  %v3445_v51 = vld [vmem:[#allocation7 + $0x1d4] ss:$8 sps:$4 sm:$0xff]  }
 0x25f   :  { %v1834_v28 = vsub.f32 %v1779_v24, %v1832_v23  ;;  %v3443_v24 = vld [vmem:[#allocation7 + $0x1d0] ss:$8 sps:$4 sm:$0xff]   ;;  %v3448_v23 = vld [vmem:[#allocation7 + $0x1e4] ss:$8 sps:$4 sm:$0xff]  }
 0x261   :  { %v1859_v25 = vrot.slane %v1834_v28, %v1795_v3  ;;  %v1851_v26 = vrot.slane %v1834_v28, %v3821_v1  ;;  %v1847_v5 = vrot.slane %v1834_v28, %v3818_v53  ;;  %v1855_v56 = vrot.slane %v1834_v28, %v1791_v2  ;;  %v3407_v2 = vld [vmem:[#allocation7 + $0x110] ss:$8 sps:$4 sm:$0xff]   ;;  %v3412_v3 = vld [vmem:[#allocation7 + $0x124] ss:$8 sps:$4 sm:$0xff]   ;;  %v3446_v28 = vld [vmem:[#allocation7 + $0x1e0] ss:$8 sps:$4 sm:$0xff]  }
 0x263   :  { %v1871_v27 = vadd.f32 %v1859_v25, %v1842_v15  ;;  %v1865_v34 = vadd.f32 %v1851_v26, %v1836_v16  ;;  %v1869_v10 = vadd.f32 %v1851_v26, %v1840_v17  ;;  %v1864_v29 = vadd.f32 %v1847_v5, %v1835_v18  ;;  %v3427_v15 = vld [vmem:[#allocation7 + $0x174] ss:$8 sps:$4 sm:$0xff]   ;;  %v3425_v16 = vld [vmem:[#allocation7 + $0x170] ss:$8 sps:$4 sm:$0xff]   ;;  %v3430_v17 = vld [vmem:[#allocation7 + $0x184] ss:$8 sps:$4 sm:$0xff]  }
 0x264   :  { %v1868_v30 = vadd.f32 %v1847_v5, %v1839_v21  ;;  %v1867_v31 = vadd.f32 %v1859_v25, %v1838_v22  ;;  %v1866_v32 = vadd.f32 %v1855_v56, %v1837_v8  ;;  %v1870_v33 = vadd.f32 %v1855_v56, %v1841_v12  ;;  %v3428_v18 = vld [vmem:[#allocation7 + $0x180] ss:$8 sps:$4 sm:$0xff]   ;;  %v3436_v21 = vld [vmem:[#allocation7 + $0x1a4] ss:$8 sps:$4 sm:$0xff]   ;;  %v3439_v8 = vld [vmem:[#allocation7 + $0x1b4] ss:$8 sps:$4 sm:$0xff]  }
 0x265   :  { %v1873_v36 = vmul.f32 0.2, %v1865_v34  ;;  %v1877_v39 = vmul.f32 0.2, %v1869_v10  ;;  %v1872_v40 = vmul.f32 0.2, %v1864_v29 }
 0x266   :  { %v1876_v41 = vmul.f32 0.2, %v1868_v30  ;;  %v1875_v43 = vmul.f32 0.2, %v1867_v31  ;;  %v1879_v44 = vmul.f32 0.2, %v1871_v27 }
 0x267   :  { %v1881_v46 = vmax.f32 %v1865_v34, %v1873_v36  ;;  %v1885_v47 = vmax.f32 %v1869_v10, %v1877_v39  ;;  %v1880_v49 = vmax.f32 %v1864_v29, %v1872_v40  ;;  %v1874_v50 = vmul.f32 0.2, %v1866_v32  ;;  %v3434_v22 = vld [vmem:[#allocation7 + $0x1a0] ss:$8 sps:$4 sm:$0xff]   ;;  %v3437_v12 = vld [vmem:[#allocation7 + $0x1b0] ss:$8 sps:$4 sm:$0xff]  }
 0x268   :  { %v1884_v52 = vmax.f32 %v1868_v30, %v1876_v41  ;;  %v1883_v54 = vmax.f32 %v1867_v31, %v1875_v43  ;;  %v1887_v55 = vmax.f32 %v1871_v27, %v1879_v44  ;;  %v1878_v57 = vmul.f32 0.2, %v1870_v33  ;;  %v3451_v25 = vld [vmem:[#allocation7 + $0x1f4] ss:$8 sps:$4 sm:$0xff]   ;;  %v3449_v26 = vld [vmem:[#allocation7 + $0x1f0] ss:$8 sps:$4 sm:$0xff]  }
 0x269   :  { %v1889_v58 = vpack.c.bf16 %v1885_v47, %v1881_v46  ;;  %v1882_v62 = vmax.f32 %v1866_v32, %v1874_v50  ;;  %v3452_v5 = vld [vmem:[#allocation8 + $0x40] sm:$0xff]   ;;  %v3454_v27 = vld [vmem:[#allocation8 + $0x48] sm:$0xff]   ;;  %v3456_v10 = vld [vmem:[#allocation8 + $0x50] sm:$0xff]  }
 0x26a   :  { %v1888_v42 = vpack.c.bf16 %v1884_v52, %v1880_v49  ;;  %v1891_v45 = vpack.c.bf16 %v1887_v55, %v1883_v54  ;;  %v1886_v63 = vmax.f32 %v1870_v33, %v1878_v57  ;;  %v3453_v56 = vld [vmem:[#allocation8] sm:$0xff]   ;;  %2987 = vmatprep.subr.bf16.mxu1 %v3452_v5  ;;  %v3455_v34 = vld [vmem:[#allocation8 + $0x8] sm:$0xff]   ;;  %v3457_v29 = vld [vmem:[#allocation8 + $0x10] sm:$0xff]  }
 0x26b   :  { %2308 = vmatprep.mubr.bf16.mxu0 %v1889_v58  ;;  %2988 = vmatpush3.bf16.msra.mxu1 %v3453_v56  ;;  %v3458_v30 = vld [vmem:[#allocation8 + $0x58] sm:$0xff]   ;;  %v3460_v32 = vld [vmem:[#allocation8 + $0x60] sm:$0xff]   ;;  %v3462_v36 = vld [vmem:[#allocation8 + $0x68] sm:$0xff]  }
 0x26c   :  { %2309 = vmatmul.mubr.bf16.vlgmr.msra.gmra.mrb[8].mxu0 %v1888_v42  ;;  %v1890_v0 = vpack.c.bf16 %v1886_v63, %v1882_v62  ;;  %2989 = vmatprep.subr.bf16.mxu1 %v3454_v27  ;;  %v3459_v31 = vld [vmem:[#allocation8 + $0x18] sm:$0xff]   ;;  %v3461_v33 = vld [vmem:[#allocation8 + $0x20] sm:$0xff]   ;;  %v3463_v39 = vld [vmem:[#allocation8 + $0x28] sm:$0xff]  }
 0x26d   :  { %2320 = vmatpush1.bf16.msra.mxu0 %v3404_v61  ;;  %2351 = vmatprep.mubr.bf16.mxu0 %v1891_v45  ;;  %v3464_v40 = vld [vmem:[#allocation8 + $0x70] sm:$0xff]   ;;  %v3466_v43 = vld [vmem:[#allocation8 + $0x78] sm:$0xff]  }
 0x26e   :  { %2321 = vmatprep.subr.bf16.mxu0 %v3409_v48  ;;  %v3465_v41 = vld [vmem:[#allocation8 + $0x30] sm:$0xff]   ;;  %v3467_v44 = vld [vmem:[#allocation8 + $0x38] sm:$0xff]  }
 0x26f   :  { %2990 = vmatpush3.bf16.msra.mxu1 %v3455_v34 }
 0x270   :  { %2991 = vmatprep.subr.bf16.mxu1 %v3456_v10 }
 0x271   :  { %2322 = vmatpush1.bf16.msra.mxu0 %v3407_v2 }
 0x272   :  { %2323 = vmatprep.subr.bf16.mxu0 %v3412_v3 }
 0x273   :  { %2992 = vmatpush3.bf16.msra.mxu1 %v3457_v29 }
 0x274   :  { %2993 = vmatprep.subr.bf16.mxu1 %v3458_v30 }
 0x275   :  { %2324 = vmatpush1.bf16.msra.mxu0 %v3410_v6 }
 0x276   :  { %2325 = vmatprep.subr.bf16.mxu0 %v3415_v7 }
 0x277   :  { %2994 = vmatpush3.bf16.msra.mxu1 %v3459_v31  ;;  %v2404_v31 = vld [vmem:[%s3886_s5] sm:$0x3] }
 0x278   :  { %2995 = vmatprep.subr.bf16.mxu1 %v3460_v32 }
 0x279   :  { %2326 = vmatpush1.bf16.msra.mxu0 %v3413_v35 }
 0x27a   :  { %2327 = vmatprep.subr.bf16.mxu0 %v3418_v37 }
 0x27b   :  { %2996 = vmatpush3.bf16.msra.mxu1 %v3461_v33 }
 0x27c   :  { %2997 = vmatprep.subr.bf16.mxu1 %v3462_v36 }
 0x27d   :  { %2328 = vmatpush1.bf16.msra.mxu0 %v3416_v38 }
 0x27e   :  { %2329 = vmatprep.subr.bf16.mxu0 %v3421_v9 }
 0x27f   :  { %2998 = vmatpush3.bf16.msra.mxu1 %v3463_v39 }
 0x280   :  { %2999 = vmatprep.subr.bf16.mxu1 %v3464_v40 }
 0x281   :  { %2330 = vmatpush1.bf16.msra.mxu0 %v3419_v11 }
 0x282   :  { %2331 = vmatprep.subr.bf16.mxu0 %v3424_v13 }
 0x283   :  { %3000 = vmatpush3.bf16.msra.mxu1 %v3465_v41 }
 0x284   :  { %3001 = vmatprep.subr.bf16.mxu1 %v3466_v43 }
 0x285   :  { %2332 = vmatpush1.bf16.msra.mxu0 %v3422_v14 }
 0x286   :  { %2333 = vmatprep.subr.bf16.mxu0 %v3427_v15 }
 0x287   :  { %3002 = vmatpush3.bf16.msra.mxu1 %v3467_v44 }
 0x289   :  { %2334 = vmatpush1.bf16.msra.mxu0 %v3425_v16 }
 0x28a   :  { %2335 = vmatprep.subr.bf16.mxu0 %v3430_v17 }
 0x28d   :  { %2336 = vmatpush1.bf16.msra.mxu0 %v3428_v18 }
 0x28e   :  { %2337 = vmatprep.subr.bf16.mxu0 %v3433_v19 }
 0x291   :  { %2338 = vmatpush1.bf16.msra.mxu0 %v3431_v20 }
 0x292   :  { %2339 = vmatprep.subr.bf16.mxu0 %v3436_v21 }
 0x295   :  { %2340 = vmatpush1.bf16.msra.mxu0 %v3434_v22 }
 0x296   :  { %2341 = vmatprep.subr.bf16.mxu0 %v3439_v8 }
 0x299   :  { %2342 = vmatpush1.bf16.msra.mxu0 %v3437_v12 }
 0x29a   :  { %2343 = vmatprep.subr.bf16.mxu0 %v3442_v4 }
 0x29d   :  { %2344 = vmatpush1.bf16.msra.mxu0 %v3440_v60 }
 0x29e   :  { %2345 = vmatprep.subr.bf16.mxu0 %v3445_v51 }
 0x2a1   :  { %2346 = vmatpush1.bf16.msra.mxu0 %v3443_v24 }
 0x2a2   :  { %2347 = vmatprep.subr.bf16.mxu0 %v3448_v23 }
 0x2a5   :  { %2348 = vmatpush1.bf16.msra.mxu0 %v3446_v28 }
 0x2a6   :  { %2349 = vmatprep.subr.bf16.mxu0 %v3451_v25 }
 0x2a9   :  { %2350 = vmatpush1.bf16.msra.mxu0 %v3449_v26 }
 0x2ac   :  { %2352 = vmatmul.mubr.bf16.vlgmr.msra.gmra.mrb[8].mxu0 %v1890_v0 }
 0x37f   :  { %v3843_v46 = vpop.f32.mrb[8].mxu0 }
 0x380   :  { %v2355_v47 = vpop.f32.mrb[9].mxu0  ;;  %v2378_v50 = vmul.f32 %v3843_v46, %v3843_v46 }
 0x381   :  { %v2357_v49 = vpop.f32.mrb[10].mxu0  ;;  %v2379_v57 = vmul.f32 %v2355_v47, %v2355_v47 }
 0x382   :  { %v2362_v52 = vadd.f32 %v2357_v49, %v3843_v46  ;;  %v2380_v54 = vmul.f32 %v2357_v49, %v2357_v49  ;;  %v2359_v55 = vpop.f32.mrb[11].mxu0 }
 0x383   :  { %v2369_v58 = vadd.f32 %v2359_v55, %v2355_v47  ;;  %v2381_v61 = vmul.f32 %v2359_v55, %v2359_v55 }
 0x384   :  { %v2363_v62 = vrot.slane %v2362_v52, 4  ;;  %v2382_v42 = vadd.f32 %v2380_v54, %v2378_v50 }
 0x385   :  { %v2370_v45 = vrot.slane %v2369_v58, 4  ;;  %v2389_v48 = vadd.f32 %v2381_v61, %v2379_v57 }
 0x386   :  { %v2364_v63 = vadd.f32 %v2363_v62, %v2362_v52  ;;  %v2383_v0 = vrot.slane %v2382_v42, 4 }
 0x387   :  { %v2371_v2 = vadd.f32 %v2370_v45, %v2369_v58  ;;  %v2390_v3 = vrot.slane %v2389_v48, 4  ;;  %v2428_v58 = vld [vmem:[%s3887_s6] sm:$0x3] }
 0x388   :  { %v2365_v6 = vrot.slane %v2364_v63, 2  ;;  %v2384_v7 = vadd.f32 %v2383_v0, %v2382_v42 }
 0x389   :  { %v2372_v35 = vrot.slane %v2371_v2, 2  ;;  %v2391_v37 = vadd.f32 %v2390_v3, %v2389_v48 }
 0x38a   :  { %v2366_v38 = vadd.f32 %v2365_v6, %v2364_v63  ;;  %v2385_v9 = vrot.slane %v2384_v7, 2 }
 0x38b   :  { %v2373_v11 = vadd.f32 %v2372_v35, %v2371_v2  ;;  %v2392_v13 = vrot.slane %v2391_v37, 2 }
 0x38c   :  { %v2367_v14 = vrot.slane %v2366_v38, 1  ;;  %v2386_v15 = vadd.f32 %v2385_v9, %v2384_v7 }
 0x38d   :  { %v2374_v16 = vrot.slane %v2373_v11, 1  ;;  %v2393_v17 = vadd.f32 %v2392_v13, %v2391_v37 }
 0x38e   :  { %v2368_v18 = vadd.f32 %v2367_v14, %v2366_v38  ;;  %v2387_v19 = vrot.slane %v2386_v15, 1 }
 0x38f   :  { %v2375_v20 = vadd.f32 %v2374_v16, %v2373_v11  ;;  %v2394_v21 = vrot.slane %v2393_v17, 1 }
 0x390   :  { %v2376_v22 = vmul.f32 0.0625, %v2368_v18  ;;  %v2388_v8 = vadd.f32 %v2387_v19, %v2386_v15 }
 0x391   :  { %v2377_v12 = vmul.f32 0.0625, %v2375_v20  ;;  %v2395_v4 = vadd.f32 %v2394_v21, %v2393_v17 }
 0x392   :  { %v2396_v60 = vmul.f32 0.0625, %v2388_v8  ;;  %v2398_v51 = vmul.f32 %v2376_v22, %v2376_v22 }
 0x393   :  { %v2397_v24 = vmul.f32 0.0625, %v2395_v4  ;;  %v2399_v23 = vmul.f32 %v2377_v12, %v2377_v12 }
 0x394   :  { %v2400_v28 = vsub.f32 %v2396_v60, %v2398_v51 }
 0x395   :  { %v2401_v25 = vsub.f32 %v2397_v24, %v2399_v23 }
 0x396   :  { %v2402_v26 = vmax.f32 %v2400_v28, 0.0 }
 0x397   :  { %v2403_v5 = vmax.f32 %v2401_v25, 0.0 }
 0x398   :  { %v2405_v56 = vadd.f32 1e-05, %v2402_v26 }
 0x399   :  { %v2406_v27 = vadd.f32 1e-05, %v2403_v5 }
 0x39a   :  { %3476 = vrsqrt.f32 %v2405_v56 }
 0x39b   :  { %3478 = vrsqrt.f32 %v2406_v27 }
 0x3a4   :  { %v3477_v34 = vpop.eup %3476 }
 0x3a5   :  { %v3479_v10 = vpop.eup %3478 }
 0x3a6   :  { %v2411_v29 = vcombine.low %v3477_v34, %v3479_v10 }
 0x3a8   :  { %v2418_v30 = vrot.slane %v2411_v29, %v3808_v59 }
 0x3aa   :  { %v2425_v32 = vrot.slane %v2418_v30, %v3808_v59 }
 0x3ac   :  { %v2427_v33 = vmul.f32 %v2425_v32, %v2404_v31 }
 0x3ae   :  { %v2433_v36 = vrot.slane %v2427_v33, %v3818_v53  ;;  %v2437_v39 = vrot.slane %v2427_v33, %v3821_v1 }
 0x3b0   :  { %v2440_v40 = vmul.f32 %v2433_v36, %v2376_v22  ;;  %v2441_v41 = vmul.f32 %v2437_v39, %v2377_v12  ;;  %v2462_v43 = vmul.f32 %v2437_v39, %v2355_v47  ;;  %v2464_v44 = vmul.f32 %v2437_v39, %v2359_v55 }
 0x3b1   :  { %v2461_v50 = vmul.f32 %v2433_v36, %v3843_v46  ;;  %v2463_v52 = vmul.f32 %v2433_v36, %v2357_v49 }
 0x3b2   :  { %v2444_v54 = vcombine.low %v2440_v40, %v2441_v41 }
 0x3b4   :  { %v2451_v57 = vrot.slane %v2444_v54, %v3808_v59 }
 0x3b6   :  { %v2458_v61 = vrot.slane %v2451_v57, %v3808_v59 }
 0x3b8   :  { %v2460_v62 = vsub.f32 %v2428_v58, %v2458_v61 }
 0x3ba   :  { %v2469_v42 = vrot.slane %v2460_v62, %v3818_v53  ;;  %v2473_v45 = vrot.slane %v2460_v62, %v3821_v1  ;;  %v2968_v53 = vld [vmem:[%s3889_s8] ss:$0 sm:$0xff]  ;;  %s3576_s8 = scalar_lea.vmem %s2686_s26, 256 }
 0x3bb   :  { %p3577_p4 = scmp.ne.s32.totalorder %s2686_s26, %s3576_s8  ;;  %p3582_p6 = scmp.lt.s32.totalorder %s3576_s8, %s3576_s8 }
 0x3bc   :  { %v2477_v48 = vadd.f32 %v2473_v45, %v2462_v43  ;;  %v2479_v47 = vadd.f32 %v2473_v45, %v2464_v44  ;;  %v2476_v55 = vadd.f32 %v2469_v42, %v2461_v50  ;;  %v2478_v63 = vadd.f32 %v2469_v42, %v2463_v52 }
 0x3bd   :  { %p3583_p7 = por %p3582_p6, %p3581_p5 }
 0x3be   :  { %v2483_v46 = vmul.f32 0.2, %v2479_v47  ;;  %v2481_v49 = vmul.f32 0.2, %v2477_v48  ;;  %v2480_v0 = vmul.f32 0.2, %v2476_v55 }
 0x3bf   :  { %v2482_v2 = vmul.f32 0.2, %v2478_v63  ;;  %p3584_p8 = pnand %p3583_p7, %p3577_p4 }
 0x3c0   :  { %v2487_v3 = vmax.f32 %v2479_v47, %v2483_v46  ;;  %v2485_v6 = vmax.f32 %v2477_v48, %v2481_v49  ;;  %v2484_v7 = vmax.f32 %v2476_v55, %v2480_v0 }
 0x3c1   :  { %v2486_v35 = vmax.f32 %v2478_v63, %v2482_v2 }
 0x3c2   :  { %v2489_v37 = vpack.c.bf16 %v2487_v3, %v2485_v6 }
 0x3c3   :  { %v2488_v38 = vpack.c.bf16 %v2486_v35, %v2484_v7 }
 0x3c4   :  { %2657 = vmatprep.mubr.bf16.mxu1 %v2489_v37 }
 0x3c5   :  { %2658 = vmatmul.mubr.bf16.vlgmr.msra.gmra.mrb[8].mxu1 %v2488_v38 }
 0x498   :  { %v3003_v59 = vpop.f32.mrb[8].mxu1 }
 0x499   :  { %v3004_v1 = vpop.f32.mrb[9].mxu1 }
 0x49a   :  { %v3005_v9 = vadd.f32 %v3004_v1, %v3003_v59  ;;  %v3006_v11 = vpop.f32.mrb[10].mxu1 }
 0x49b   :  { %v3007_v13 = vpop.f32.mrb[11].mxu1 }
 0x49c   :  { %v2660_v14 = vadd.f32 %v3005_v9, %v2968_v53  ;;  %v3008_v15 = vadd.f32 %v3007_v13, %v3006_v11 }
 0x49e   :  { %v2985_v16 = vmul.f32 -1.442695, %v2660_v14  ;;  %v2663_v17 = vadd.f32 %v3008_v15, %v2968_v53 }
 0x4a0   :  { %3480 = vpow2.f32 %v2985_v16  ;;  %v2986_v18 = vmul.f32 -1.442695, %v2663_v17 }
 0x4a2   :  { %3482 = vpow2.f32 %v2986_v18 }
 0x4aa   :  { %v3481_v19 = vpop.eup %3480 }
 0x4ab   :  { %v2672_v20 = vadd.f32 1.0, %v3481_v19 }
 0x4ac   :  { %v3483_v21 = vpop.eup %3482 }
 0x4ad   :  { %3484 = vrcp.f32 %v2672_v20  ;;  %v2673_v22 = vadd.f32 1.0, %v3483_v21 }
 0x4af   :  { %3486 = vrcp.f32 %v2673_v22 }
 0x4b7   :  { %v3485_v8 = vpop.eup %3484 }
 0x4b8   :  { %2678 = vst [vmem:[#allocation10] sm:$0xff] %v3485_v8 }
 0x4b9   :  { %v3487_v12 = vpop.eup %3486 }
 0x4ba   :  { %2679 = vst [vmem:[#allocation10 + $0x8] sm:$0xff] %v3487_v12 }
 0x4bb   :  { %3587 = shalt.err (!%p3584_p8)
}
 0x4bc   :  { %s3588_s29 = scalar_lea.hbm %s3890_s9, 256 }
 0x4bd   :  { %p3589_p9 = scmp.ne.s32.totalorder %s3890_s9, %s3588_s29  ;;  %p3592_p10 = scmp.lt.u32.totalorder %s3588_s29, %s3890_s9 }
 0x4bf   :  { %p3594_p11 = pnand %p3592_p10, %p3589_p9 }
 0x4c1   :  { %3597 = shalt.err (!%p3594_p11)
}
 0x4c2   :  { %2691 = dma.vmem_to_hbm [thread:$0]  %s2686_s26, 256, %s3890_s9, [#allocation4], %s3613_s0, %s3613_s0, %s3614_s24  }
 0x4c3   :  { %3604 = dma.done.wait [#allocation4], 256  }
 0x4c4   :  { %3605 = vsyncadd [#allocation4], 4294967040 }
 0x4c5   :  { %2695 = vsyncpa [#allocation3], 1 }
 0x4c6   :  { %2696 = vsyncpa [#allocation6], 1 }
 0x4c7   :  { %2697 = vsyncpa [#allocation9], 1 }
 0x4c8   :  { %2698 = vsyncpa [#allocation4], 1 }

</bundles_post_ra>
